<compile_context>
chip_gen: v7x
topology: tpu7x:2x2x1
jax: 0.10.0
libtpu: 0.0.40
codegen_flags: <defaults>
</compile_context>

<pallas_src>
import functools
import math
from dataclasses import dataclass

import jax
import jax.numpy as jnp
from jax.experimental import pallas as pl
from jax.experimental.pallas import tpu as pltpu


# ----------------------------- config ------------------------------------- #
@dataclass
class MoEConfig:
    hidden_size: int = 32
    intermediate_size: int = 64
    heads: int = 4
    epsilon: float = 1e-5
    moe_experts: int = 4       # local experts
    global_experts: int = 4    # == moe_experts since ep world size == 1
    k: int = 1
    eval_capacity_factor: float = 1.0
    min_capacity: int = 4
    mlp_type: str = "residual"
    pre_layer_norm: bool = True
    return_tuple: bool = True


def _round_up(x, m):
    return ((x + m - 1) // m) * m


def _pick_row_tile(t):
    # Largest MXU/sublane-friendly row tile that yields >= 2 grid steps.
    for cand in (256, 128, 64, 32, 16, 8):
        if t % cand == 0 and t // cand >= 2:
            return cand
    return t


# ----------------------------- in-kernel helpers --------------------------- #
def _gelu_tanh(x):
    # DeepSpeed inference gelu (tanh approximation)
    return 0.5 * x * (1.0 + jnp.tanh(0.7978845608028654 * (x + 0.044715 * x * x * x)))


def _ln(x, w, b, eps):
    mu = jnp.mean(x, axis=-1, keepdims=True)
    var = jnp.mean(jnp.square(x - mu), axis=-1, keepdims=True)
    return (x - mu) * jax.lax.rsqrt(var + eps) * w + b


def _softmax_lastdim(x):
    m = jnp.max(x, axis=-1, keepdims=True)
    e = jnp.exp(x - m)
    # EUP approximate reciprocal: divide moved off the VPU (inference-OK).
    return e * pl.reciprocal(jnp.sum(e, axis=-1, keepdims=True), approx=True)


# ----------------------------- kernel A: attention block ------------------- #
def _attn_block_kernel(*refs, eps, heads, seq, pre_ln, with_res):
    if with_res:
        (x_ref, nw, nb, qkvw, qkvb, ow, ob, anw, anb, gw,
         riw, rib, row, rob,
         resadd_ref, attnout_ref, logits_ref, resmlp_ref) = refs
    else:
        (x_ref, nw, nb, qkvw, qkvb, ow, ob, anw, anb, gw,
         resadd_ref, attnout_ref, logits_ref) = refs

    H = x_ref.shape[-1]
    d = H // heads
    S = seq
    scale = 1.0 / math.sqrt(d)

    x = x_ref[0].astype(jnp.float32)                                  # (S, H)
    ln_in = _ln(x, nw[...], nb[...], eps) if pre_ln else x
    qkv = jnp.dot(ln_in, qkvw[...], preferred_element_type=jnp.float32) + qkvb[...]

    ow_v = ow[...]                                                    # (H, H)
    attn_out = jnp.zeros((S, H), jnp.float32)
    # All heads in one invocation; head slices are static lane slices of the
    # fused QKV result -> no XLA split_heads transposes / HBM copies.
    # TODO(synk): at large S tile KV with an online (flash-style) softmax; at
    # large H iterate lane-aligned head groups with lax.fori_loop + a VMEM
    # scratch accumulator, and stream the QKV weight over its N dimension.
    for h in range(heads):
        qh = qkv[:, h * d:(h + 1) * d]
        kh = qkv[:, H + h * d:H + (h + 1) * d]
        vh = qkv[:, 2 * H + h * d:2 * H + (h + 1) * d]
        s = jax.lax.dot_general(qh, kh, (((1,), (1,)), ((), ())),
                                preferred_element_type=jnp.float32) * scale   # (S, S)
        p = _softmax_lastdim(s)
        ctx = jnp.dot(p, vh, preferred_element_type=jnp.float32)              # (S, d)
        # Per-head accumulation of the output projection == concat(ctx) @ attn_ow
        attn_out = attn_out + jnp.dot(ctx, ow_v[h * d:(h + 1) * d, :],
                                      preferred_element_type=jnp.float32)

    # residual_add = attention_output + attn_ob   (matches moe_inference.py;
    # TODO(synk): DeepSpeed's residual path carries only attn_ob here — the block
    # input is not re-added in the reference forward; kept identical to the spec.)
    residual_add = attn_out + ob[...]
    resadd_ref[0] = residual_add.astype(resadd_ref.dtype)

    attn_norm = _ln(residual_add, anw[...], anb[...], eps)
    attnout_ref[0] = attn_norm.astype(attnout_ref.dtype)

    # Fused MoE gate logits: read attention_output from VMEM, not HBM.
    logits_ref[0] = jnp.dot(attn_norm, gw[...],
                            preferred_element_type=jnp.float32).astype(logits_ref.dtype)

    if with_res:
        # PR-MoE residual branch: gelu(x @ W1 + b1) @ W2 + b2, fused here so the
        # normalized activations never leave VMEM.
        h1 = jnp.dot(attn_norm, riw[...], preferred_element_type=jnp.float32) + rib[...]
        h1 = _gelu_tanh(h1)
        rm = jnp.dot(h1, row[...], preferred_element_type=jnp.float32) + rob[...]
        resmlp_ref[0] = rm.astype(resmlp_ref.dtype)


def attention_block(x, params, config):
    B, S, H = x.shape
    E = params["gate_w"].shape[-1]
    with_res = config.mlp_type == "residual"

    const2 = lambda b: (0, 0)
    row3 = lambda b: (b, 0, 0)

    inputs = [
        x,
        params["norm_w"].reshape(1, H), params["norm_b"].reshape(1, H),
        params["qkv_w"], params["qkv_b"].reshape(1, -1),
        params["attn_ow"], params["attn_ob"].reshape(1, H),
        params["attn_nw"].reshape(1, H), params["attn_nb"].reshape(1, H),
        params["gate_w"],
    ]
    in_specs = [
        pl.BlockSpec((1, S, H), row3),
        pl.BlockSpec((1, H), const2), pl.BlockSpec((1, H), const2),
        pl.BlockSpec((H, 3 * H), const2), pl.BlockSpec((1, 3 * H), const2),
        pl.BlockSpec((H, H), const2), pl.BlockSpec((1, H), const2),
        pl.BlockSpec((1, H), const2), pl.BlockSpec((1, H), const2),
        pl.BlockSpec((H, E), const2),
    ]
    out_shapes = [jax.ShapeDtypeStruct((B, S, H), x.dtype),     # residual_add
                  jax.ShapeDtypeStruct((B, S, H), x.dtype),     # attention_output
                  jax.ShapeDtypeStruct((B, S, E), jnp.float32)]  # gate logits
    out_specs = [pl.BlockSpec((1, S, H), row3),
                 pl.BlockSpec((1, S, H), row3),
                 pl.BlockSpec((1, S, E), row3)]
    if with_res:
        I = params["res_inter_w"].shape[-1]
        inputs += [params["res_inter_w"], params["res_inter_b"].reshape(1, I),
                   params["res_output_w"], params["res_output_b"].reshape(1, H)]
        in_specs += [pl.BlockSpec((H, I), const2), pl.BlockSpec((1, I), const2),
                     pl.BlockSpec((I, H), const2), pl.BlockSpec((1, H), const2)]
        out_shapes.append(jax.ShapeDtypeStruct((B, S, H), x.dtype))  # res_mlp_out
        out_specs.append(pl.BlockSpec((1, S, H), row3))

    kern = functools.partial(
        _attn_block_kernel, eps=config.epsilon, heads=config.heads,
        seq=S, pre_ln=config.pre_layer_norm, with_res=with_res)

    outs = pl.pallas_call(
        kern,
        out_shape=tuple(out_shapes),
        grid=(B,),
        in_specs=in_specs,
        out_specs=tuple(out_specs),
        compiler_params=pltpu.CompilerParams(
            dimension_semantics=("parallel",),
            vmem_limit_bytes=32 * 1024 * 1024),
    )(*inputs)
    if with_res:
        return outs[0], outs[1], outs[2], outs[3]
    return outs[0], outs[1], outs[2], None


# ------------- kernel B: gather + expert MLP + scatter-accumulate ---------- #
def _moe_expert_kernel(idx_ref, gate_ref, x_ref, w1_ref, b1_ref, w2_ref, b2_ref,
                       o_ref, disp_scr, eo_scr, *, cap):
    c = pl.program_id(0)                      # megacore column (parallel)
    e = pl.program_id(1)                      # expert within column (arbitrary)
    row = c * pl.num_programs(1) + e          # global expert index into idx_ref

    # Zero the shared (T, H) accumulator on the first expert of this column.
    @pl.when(e == 0)
    def _():
        o_ref[...] = jnp.zeros_like(o_ref)

    # Dispatch: gather the `cap` routed token rows (scalar-prefetch indices in
    # SMEM) — O(cap*H) DMA-ish work instead of a (T,cap)x(T,H) dense contraction.
    def gather(i, carry):
        t = idx_ref[row, i]
        disp_scr[pl.ds(i, 1), :] = x_ref[pl.ds(t, 1), :].astype(jnp.float32)
        return carry

    jax.lax.fori_loop(0, cap, gather, 0, unroll=True)

    # Expert MLP on the gathered (cap, H) block.
    h = jnp.dot(disp_scr[...], w1_ref[0, 0],
                preferred_element_type=jnp.float32) + b1_ref[0, 0]
    h = _gelu_tanh(h)
    eo = jnp.dot(h, w2_ref[0, 0],
                 preferred_element_type=jnp.float32) + b2_ref[0, 0]          # (cap, H)
    # Scale by the combine (gate) weight; padded / empty slots carry gate 0.
    eo_scr[...] = eo * gate_ref[0, 0].astype(jnp.float32)

    # Combine: scatter-accumulate each routed token row into the shared output.
    out2 = o_ref.at[0]                                                        # (T, H) view

    def scatter(i, carry):
        t = idx_ref[row, i]
        out2[pl.ds(t, 1), :] = (out2[pl.ds(t, 1), :].astype(jnp.float32)
                                + eo_scr[pl.ds(i, 1), :]).astype(o_ref.dtype)
        return carry

    jax.lax.fori_loop(0, cap, scatter, 0, unroll=True)


def moe_experts(expert_idx, expert_gate, attn_out, w1, b1, w2, b2):
    # expert_idx/expert_gate: (E, cap);  attn_out: (T, H)
    E, cap = expert_idx.shape
    T, H = attn_out.shape
    I = w1.shape[-1]
    # Split experts into two "columns" so v7x's 2 TensorCores each own one (T,H)
    # accumulator; the epilogue sums the 2 partials.
    NC = 2 if E % 2 == 0 else 1
    EC = E // NC

    gate4 = expert_gate.reshape(NC, EC, cap, 1).astype(jnp.float32)
    w1r = w1.reshape(NC, EC, H, I)
    b1r = b1.reshape(NC, EC, 1, I)
    w2r = w2.reshape(NC, EC, I, H)
    b2r = b2.reshape(NC, EC, 1, H)

    # TODO(synk): at realistic H/I the per-expert weights must be K-tiled (extra
    # reduction grid axis over I) with a (cap, H) f32 VMEM accumulator to fit
    # v7x's 64 MiB VMEM; at realistic T the resident (T, H) x block should be
    # tiled as well.
    kern = functools.partial(_moe_expert_kernel, cap=cap)
    return pl.pallas_call(
        kern,
        out_shape=jax.ShapeDtypeStruct((NC, T, H), attn_out.dtype),
        grid_spec=pltpu.PrefetchScalarGridSpec(
            num_scalar_prefetch=1,                                  # expert_idx -> SMEM
            grid=(NC, EC),
            in_specs=[
                pl.BlockSpec((1, 1, cap, 1), lambda c, e, idx: (c, e, 0, 0)),
                pl.BlockSpec((T, H), lambda c, e, idx: (0, 0)),
                pl.BlockSpec((1, 1, H, I), lambda c, e, idx: (c, e, 0, 0)),
                pl.BlockSpec((1, 1, 1, I), lambda c, e, idx: (c, e, 0, 0)),
                pl.BlockSpec((1, 1, I, H), lambda c, e, idx: (c, e, 0, 0)),
                pl.BlockSpec((1, 1, 1, H), lambda c, e, idx: (c, e, 0, 0)),
            ],
            out_specs=pl.BlockSpec((1, T, H), lambda c, e, idx: (c, 0, 0)),
            scratch_shapes=[pltpu.VMEM((cap, H), jnp.float32),   # dispatched rows
                            pltpu.VMEM((cap, H), jnp.float32)],  # scaled expert out
        ),
        compiler_params=pltpu.CompilerParams(
            dimension_semantics=("parallel", "arbitrary"),
            vmem_limit_bytes=32 * 1024 * 1024),
    )(expert_idx, gate4, attn_out, w1r, b1r, w2r, b2r)


# ----------------------- kernel C: fused epilogue --------------------------- #
def _epilogue_kernel(*refs, eps, with_res, post_ln):
    it = iter(refs)
    partials_ref = next(it)
    if with_res:
        attn_ref = next(it)
        coefw_ref = next(it)
        resmlp_ref = next(it)
    resadd_ref = next(it)
    if post_ln:
        nw = next(it)
        nb = next(it)
    o_ref = next(it)

    combined = jnp.sum(partials_ref[...].astype(jnp.float32), axis=0)    # (tile, H)
    if with_res:
        # res_coef_func: vector_matmul + softmax(dim=-1), fused with its consumer
        # so the (tile, 2) coefficients never hit HBM.
        logits = jnp.dot(attn_ref[...].astype(jnp.float32), coefw_ref[...],
                         preferred_element_type=jnp.float32)             # (tile, 2)
        coef = _softmax_lastdim(logits)
        # moe_res_matmul: res_mlp_out * coef[...,0] + moe_out * coef[...,1]
        out = (resmlp_ref[...].astype(jnp.float32) * coef[:, 0:1]
               + combined * coef[:, 1:2])
    else:
        out = combined
    # bias_residual (the bias arg of the reference op is an empty placeholder)
    out = out + resadd_ref[...].astype(jnp.float32)
    if post_ln:
        out = _ln(out, nw[...], nb[...], eps)
    o_ref[...] = out.astype(o_ref.dtype)


def moe_epilogue(partials, attn_out, res_mlp_out, residual_add, params, config):
    with_res = config.mlp_type == "residual"
    post_ln = not config.pre_layer_norm
    NC = partials.shape[0]
    T, H = attn_out.shape
    tile = _pick_row_tile(T)
    grid = (T // tile,)

    row_spec = pl.BlockSpec((tile, H), lambda i: (i, 0))
    inputs = [partials]
    in_specs = [pl.BlockSpec((NC, tile, H), lambda i: (0, i, 0))]
    if with_res:
        inputs += [attn_out, params["res_coef"], res_mlp_out]
        in_specs += [row_spec, pl.BlockSpec((H, 2), lambda i: (0, 0)), row_spec]
    inputs.append(residual_add)
    in_specs.append(row_spec)
    resadd_index = len(inputs) - 1
    if post_ln:
        inputs += [params["norm_w"].reshape(1, H), params["norm_b"].reshape(1, H)]
        in_specs += [pl.BlockSpec((1, H), lambda i: (0, 0)),
                     pl.BlockSpec((1, H), lambda i: (0, 0))]

    kern = functools.partial(_epilogue_kernel, eps=config.epsilon,
                             with_res=with_res, post_ln=post_ln)
    return pl.pallas_call(
        kern,
        out_shape=jax.ShapeDtypeStruct((T, H), attn_out.dtype),
        grid=grid,
        in_specs=in_specs,
        out_specs=row_spec,
        # residual_add is consumed only here -> alias it to the output buffer.
        input_output_aliases={resadd_index: 0},
        compiler_params=pltpu.CompilerParams(
            dimension_semantics=("parallel",),
            vmem_limit_bytes=32 * 1024 * 1024),
    )(*inputs)


# ----------------------------- gating (plain-JAX glue) --------------------- #
def top1_gate_indices(gate_logits, num_experts, capacity, capacity_pad):
    """DeepSpeed TopKGate (k=1, eval mode, no noise/rts, drop_tokens=True).

    Instead of dense (E, T, cap) dispatch/combine tensors, returns per-expert
    slot -> token indices and gate values so the expert kernel can gather /
    scatter.  The drop logic uses the reference `capacity`; slot arrays are
    padded to `capacity_pad` (padded slots carry gate 0, numerically inert).
    """
    T = gate_logits.shape[0]
    gates = jax.nn.softmax(gate_logits, axis=-1)                      # (T, E)
    idx = jnp.argmax(gates, axis=-1)                                  # (T,)
    mask1 = jax.nn.one_hot(idx, num_experts, dtype=jnp.float32)       # (T, E)
    locations1 = jnp.cumsum(mask1, axis=0) - 1.0                      # slot per expert
    in_cap = mask1 * (locations1 < capacity).astype(jnp.float32)      # drop over-capacity
    gate_val = jnp.sum(gates * in_cap, axis=-1)                       # (T,)
    slot = jnp.sum(locations1 * in_cap, axis=-1).astype(jnp.int32)    # (T,)
    valid = jnp.sum(in_cap, axis=-1) > 0.0                            # (T,)

    token_ids = jnp.arange(T, dtype=jnp.int32)
    e_w = jnp.where(valid, idx.astype(jnp.int32), num_experts)        # OOB -> dropped
    c_w = jnp.where(valid, slot, capacity_pad)

    expert_idx = jnp.zeros((num_experts, capacity_pad), jnp.int32
                           ).at[e_w, c_w].set(token_ids, mode="drop")
    expert_gate = jnp.zeros((num_experts, capacity_pad), jnp.float32
                            ).at[e_w, c_w].set(gate_val, mode="drop")
    return expert_idx, expert_gate


# ----------------------------- forward ------------------------------------- #
def deepscale_moe_inference_forward(params, config, x):
    B, S, H = x.shape
    T = B * S
    E = config.global_experts
    capacity = max(
        config.min_capacity,
        int(math.ceil(T / E * config.eval_capacity_factor * config.k)),
    )
    capacity_pad = _round_up(capacity, 8)   # sublane-align the (cap, H) blocks

    # --- fused attention block (+ residual-MoE MLP branch + gate logits) ---
    # TODO(synk): original DeepScaleSelfAttention masks / KV-cache / int8 paths
    # are not modeled.
    residual_add, attention_output, gate_logits, res_mlp_out = attention_block(
        x, params, config)

    attn_flat = attention_output.reshape(T, H)

    # --- MoE gate (plain-JAX glue on the fused logits) ---
    expert_idx, expert_gate = top1_gate_indices(
        gate_logits.reshape(T, E), E, capacity, capacity_pad)

    # _alltoall: ep world size == 1 -> identity.
    # TODO(synk): dist.all_to_all_single / all_reduce / all_gather not modeled.

    # --- gather + expert MLP + scatter-accumulate, experts summed in-kernel ---
    partials = moe_experts(
        expert_idx, expert_gate, attn_flat,
        params["exp_inter_w"], params["exp_inter_b"],
        params["exp_output_w"], params["exp_output_b"],
    )                                                                 # (NC, T, H)

    # --- fused epilogue: column sum + res-coef softmax + moe_res_matmul +
    #     bias_residual (+ post-LN when post-norm), tiled over token rows ---
    out = moe_epilogue(
        partials, attn_flat,
        res_mlp_out.reshape(T, H) if res_mlp_out is not None else None,
        residual_add.reshape(T, H), params, config)

    out = out.reshape(B, S, H)
    return (out,) if config.return_tuple else out


# ----------------------------- params -------------------------------------- #
def init_params(key, config):
    H, I = config.hidden_size, config.intermediate_size
    E = config.moe_experts
    ks = jax.random.split(key, 14)

    def nrm(k, shape, scale=0.05):
        return (scale * jax.random.normal(k, shape)).astype(jnp.float32)

    return {
        "norm_w": jnp.ones((H,), jnp.float32),
        "norm_b": jnp.zeros((H,), jnp.float32),
        "attn_nw": jnp.ones((H,), jnp.float32),
        "attn_nb": jnp.zeros((H,), jnp.float32),
        "qkv_w": nrm(ks[0], (H, 3 * H)),
        "qkv_b": nrm(ks[1], (3 * H,)),
        "attn_ow": nrm(ks[2], (H, H)),
        "attn_ob": nrm(ks[3], (H,)),
        "res_inter_w": nrm(ks[4], (H, I)),
        "res_inter_b": nrm(ks[5], (I,)),
        "res_output_w": nrm(ks[6], (I, H)),
        "res_output_b": nrm(ks[7], (H,)),
        "res_coef": nrm(ks[8], (H, 2)),
        "gate_w": nrm(ks[9], (H, config.global_experts)),
        "exp_inter_w": nrm(ks[10], (E, H, I)),
        "exp_inter_b": nrm(ks[11], (E, I)),
        "exp_output_w": nrm(ks[12], (E, I, H)),
        "exp_output_b": nrm(ks[13], (E, H)),
    }


# ----------------------------- main ----------------------------------------- #
if __name__ == "__main__":
    config = MoEConfig()
    key = jax.random.PRNGKey(0)
    k_param, k_in = jax.random.split(key)
    params = init_params(k_param, config)

    # input: [batch=2, seq=8, hidden=32], fp32 (module asserts dtype != bf16)
    x = jax.random.normal(k_in, (2, 8, config.hidden_size), dtype=jnp.float32)

    fwd = jax.jit(lambda p, xx: deepscale_moe_inference_forward(p, config, xx))
    out = fwd(params, x)
    jax.block_until_ready(out[0])
    assert out[0].shape == x.shape and out[0].dtype == x.dtype
    assert bool(jnp.all(jnp.isfinite(out[0])))
    print("KERNEL_OK")
</pallas_src>

<mosaic_0001>
module attributes {stable_mosaic.version = 11 : i64} {
  func.func @_attn_block_kernel(%arg0: i32, %arg1: memref<1x8x32xf32, #tpu.memory_space<vmem>>, %arg2: memref<1x32xf32, #tpu.memory_space<vmem>>, %arg3: memref<1x32xf32, #tpu.memory_space<vmem>>, %arg4: memref<32x96xf32, #tpu.memory_space<vmem>>, %arg5: memref<1x96xf32, #tpu.memory_space<vmem>>, %arg6: memref<32x32xf32, #tpu.memory_space<vmem>>, %arg7: memref<1x32xf32, #tpu.memory_space<vmem>>, %arg8: memref<1x32xf32, #tpu.memory_space<vmem>>, %arg9: memref<1x32xf32, #tpu.memory_space<vmem>>, %arg10: memref<32x4xf32, #tpu.memory_space<vmem>>, %arg11: memref<32x64xf32, #tpu.memory_space<vmem>>, %arg12: memref<1x64xf32, #tpu.memory_space<vmem>>, %arg13: memref<64x32xf32, #tpu.memory_space<vmem>>, %arg14: memref<1x32xf32, #tpu.memory_space<vmem>>, %arg15: memref<1x8x32xf32, #tpu.memory_space<vmem>>, %arg16: memref<1x8x32xf32, #tpu.memory_space<vmem>>, %arg17: memref<1x8x4xf32, #tpu.memory_space<vmem>>, %arg18: memref<1x8x32xf32, #tpu.memory_space<vmem>>) attributes {dimension_semantics = [#tpu.dimension_semantics<parallel>], iteration_bounds = array<i64: 2>, scalar_prefetch = 0 : i64, scratch_operands = 0 : i64, tpu.core_type = #tpu.core_type<tc>, window_params = [{transform_indices = @transform_0, window_bounds = array<i64: 1, 8, 32>}, {pipeline_mode = #tpu.pipeline_mode<synchronous>, transform_indices = @transform_1, window_bounds = array<i64: 1, 32>}, {pipeline_mode = #tpu.pipeline_mode<synchronous>, transform_indices = @transform_2, window_bounds = array<i64: 1, 32>}, {pipeline_mode = #tpu.pipeline_mode<synchronous>, transform_indices = @transform_3, window_bounds = array<i64: 32, 96>}, {pipeline_mode = #tpu.pipeline_mode<synchronous>, transform_indices = @transform_4, window_bounds = array<i64: 1, 96>}, {pipeline_mode = #tpu.pipeline_mode<synchronous>, transform_indices = @transform_5, window_bounds = array<i64: 32, 32>}, {pipeline_mode = #tpu.pipeline_mode<synchronous>, transform_indices = @transform_6, window_bounds = array<i64: 1, 32>}, {pipeline_mode = #tpu.pipeline_mode<synchronous>, transform_indices = @transform_7, window_bounds = array<i64: 1, 32>}, {pipeline_mode = #tpu.pipeline_mode<synchronous>, transform_indices = @transform_8, window_bounds = array<i64: 1, 32>}, {pipeline_mode = #tpu.pipeline_mode<synchronous>, transform_indices = @transform_9, window_bounds = array<i64: 32, 4>}, {pipeline_mode = #tpu.pipeline_mode<synchronous>, transform_indices = @transform_10, window_bounds = array<i64: 32, 64>}, {pipeline_mode = #tpu.pipeline_mode<synchronous>, transform_indices = @transform_11, window_bounds = array<i64: 1, 64>}, {pipeline_mode = #tpu.pipeline_mode<synchronous>, transform_indices = @transform_12, window_bounds = array<i64: 64, 32>}, {pipeline_mode = #tpu.pipeline_mode<synchronous>, transform_indices = @transform_13, window_bounds = array<i64: 1, 32>}, {transform_indices = @transform_14, window_bounds = array<i64: 1, 8, 32>}, {transform_indices = @transform_15, window_bounds = array<i64: 1, 8, 32>}, {transform_indices = @transform_16, window_bounds = array<i64: 1, 8, 4>}, {transform_indices = @transform_17, window_bounds = array<i64: 1, 8, 32>}]} {
    %c0 = arith.constant 0 : index
    %c0_0 = arith.constant 0 : index
    %c0_1 = arith.constant 0 : index
    %0 = vector.load %arg1[%c0, %c0_0, %c0_1] : memref<1x8x32xf32, #tpu.memory_space<vmem>>, vector<1x8x32xf32>
    %1 = vector.shape_cast %0 : vector<1x8x32xf32> to vector<8x32xf32>
    %c0_2 = arith.constant 0 : index
    %c0_3 = arith.constant 0 : index
    %2 = vector.load %arg2[%c0_2, %c0_3] : memref<1x32xf32, #tpu.memory_space<vmem>>, vector<1x32xf32>
    %c0_4 = arith.constant 0 : index
    %c0_5 = arith.constant 0 : index
    %3 = vector.load %arg3[%c0_4, %c0_5] : memref<1x32xf32, #tpu.memory_space<vmem>>, vector<1x32xf32>
    %cst = arith.constant dense<0.000000e+00> : vector<8xf32>
    %4 = vector.multi_reduction <add>, %1, %cst [1] : vector<8x32xf32> to vector<8xf32>
    %5 = vector.shape_cast %4 : vector<8xf32> to vector<8x1xf32>
    %cst_6 = arith.constant 3.200000e+01 : f32
    %6 = vector.broadcast %cst_6 : f32 to vector<8x1xf32>
    %7 = arith.divf %5, %6 : vector<8x1xf32>
    %8 = vector.broadcast %7 : vector<8x1xf32> to vector<8x32xf32>
    %9 = arith.subf %1, %8 : vector<8x32xf32>
    %10 = arith.mulf %9, %9 : vector<8x32xf32>
    %cst_7 = arith.constant dense<0.000000e+00> : vector<8xf32>
    %11 = vector.multi_reduction <add>, %10, %cst_7 [1] : vector<8x32xf32> to vector<8xf32>
    %12 = vector.shape_cast %11 : vector<8xf32> to vector<8x1xf32>
    %cst_8 = arith.constant 3.200000e+01 : f32
    %13 = vector.broadcast %cst_8 : f32 to vector<8x1xf32>
    %14 = arith.divf %12, %13 : vector<8x1xf32>
    %15 = vector.broadcast %7 : vector<8x1xf32> to vector<8x32xf32>
    %16 = arith.subf %1, %15 : vector<8x32xf32>
    %cst_9 = arith.constant 9.99999974E-6 : f32
    %17 = vector.broadcast %cst_9 : f32 to vector<8x1xf32>
    %18 = arith.addf %14, %17 : vector<8x1xf32>
    %19 = math.rsqrt %18 : vector<8x1xf32>
    %20 = vector.broadcast %19 : vector<8x1xf32> to vector<8x32xf32>
    %21 = arith.mulf %16, %20 : vector<8x32xf32>
    %22 = vector.broadcast %2 : vector<1x32xf32> to vector<8x32xf32>
    %23 = arith.mulf %21, %22 : vector<8x32xf32>
    %24 = vector.broadcast %3 : vector<1x32xf32> to vector<8x32xf32>
    %25 = arith.addf %23, %24 : vector<8x32xf32>
    %c0_10 = arith.constant 0 : index
    %c0_11 = arith.constant 0 : index
    %26 = vector.load %arg4[%c0_10, %c0_11] : memref<32x96xf32, #tpu.memory_space<vmem>>, vector<32x96xf32>
    %cst_12 = arith.constant dense<0.000000e+00> : vector<8x96xf32>
    %27 = tpu.matmul %25, %26, %cst_12 {dimension_numbers = #tpu.dot_dimension_numbers<[1], [0], [0], [1], [0, 0, 1, 1], [], []>} : vector<8x32xf32>, vector<32x96xf32>, vector<8x96xf32> -> vector<8x96xf32>
    %c0_13 = arith.constant 0 : index
    %c0_14 = arith.constant 0 : index
    %28 = vector.load %arg5[%c0_13, %c0_14] : memref<1x96xf32, #tpu.memory_space<vmem>>, vector<1x96xf32>
    %29 = vector.broadcast %28 : vector<1x96xf32> to vector<8x96xf32>
    %30 = arith.addf %27, %29 : vector<8x96xf32>
    %c0_15 = arith.constant 0 : index
    %c0_16 = arith.constant 0 : index
    %31 = vector.load %arg6[%c0_15, %c0_16] : memref<32x32xf32, #tpu.memory_space<vmem>>, vector<32x32xf32>
    %cst_17 = arith.constant 0.000000e+00 : f32
    %32 = vector.broadcast %cst_17 : f32 to vector<8x32xf32>
    %33 = vector.extract_strided_slice %30 {offsets = [0, 0], sizes = [8, 8], strides = [1, 1]} : vector<8x96xf32> to vector<8x8xf32>
    %34 = vector.extract_strided_slice %30 {offsets = [0, 32], sizes = [8, 8], strides = [1, 1]} : vector<8x96xf32> to vector<8x8xf32>
    %35 = vector.extract_strided_slice %30 {offsets = [0, 64], sizes = [8, 8], strides = [1, 1]} : vector<8x96xf32> to vector<8x8xf32>
    %cst_18 = arith.constant dense<0.000000e+00> : vector<8x8xf32>
    %36 = tpu.matmul %33, %34, %cst_18 {dimension_numbers = #tpu.dot_dimension_numbers<[1], [1], [0], [0], [0, 0, 1, 0], [], []>} : vector<8x8xf32>, vector<8x8xf32>, vector<8x8xf32> -> vector<8x8xf32>
    %cst_19 = arith.constant 0.353553385 : f32
    %37 = vector.broadcast %cst_19 : f32 to vector<8x8xf32>
    %38 = arith.mulf %36, %37 : vector<8x8xf32>
    %cst_20 = arith.constant dense<0xFF800000> : vector<8xf32>
    %39 = vector.multi_reduction <maximumf>, %38, %cst_20 [1] : vector<8x8xf32> to vector<8xf32>
    %40 = vector.shape_cast %39 : vector<8xf32> to vector<8x1xf32>
    %41 = vector.broadcast %40 : vector<8x1xf32> to vector<8x8xf32>
    %42 = arith.subf %38, %41 : vector<8x8xf32>
    %43 = math.exp %42 : vector<8x8xf32>
    %cst_21 = arith.constant dense<0.000000e+00> : vector<8xf32>
    %44 = vector.multi_reduction <add>, %43, %cst_21 [1] : vector<8x8xf32> to vector<8xf32>
    %45 = vector.shape_cast %44 : vector<8xf32> to vector<8x1xf32>
    %46 = tpu.reciprocal %45 {approx = true} : vector<8x1xf32> -> vector<8x1xf32>
    %47 = vector.broadcast %46 : vector<8x1xf32> to vector<8x8xf32>
    %48 = arith.mulf %43, %47 : vector<8x8xf32>
    %cst_22 = arith.constant dense<0.000000e+00> : vector<8x8xf32>
    %49 = tpu.matmul %48, %35, %cst_22 {dimension_numbers = #tpu.dot_dimension_numbers<[1], [0], [0], [1], [0, 0, 1, 1], [], []>} : vector<8x8xf32>, vector<8x8xf32>, vector<8x8xf32> -> vector<8x8xf32>
    %50 = vector.extract_strided_slice %31 {offsets = [0, 0], sizes = [8, 32], strides = [1, 1]} : vector<32x32xf32> to vector<8x32xf32>
    %cst_23 = arith.constant dense<0.000000e+00> : vector<8x32xf32>
    %51 = tpu.matmul %49, %50, %cst_23 {dimension_numbers = #tpu.dot_dimension_numbers<[1], [0], [0], [1], [0, 0, 1, 1], [], []>} : vector<8x8xf32>, vector<8x32xf32>, vector<8x32xf32> -> vector<8x32xf32>
    %52 = arith.addf %32, %51 : vector<8x32xf32>
    %53 = vector.extract_strided_slice %30 {offsets = [0, 8], sizes = [8, 8], strides = [1, 1]} : vector<8x96xf32> to vector<8x8xf32>
    %54 = vector.extract_strided_slice %30 {offsets = [0, 40], sizes = [8, 8], strides = [1, 1]} : vector<8x96xf32> to vector<8x8xf32>
    %55 = vector.extract_strided_slice %30 {offsets = [0, 72], sizes = [8, 8], strides = [1, 1]} : vector<8x96xf32> to vector<8x8xf32>
    %cst_24 = arith.constant dense<0.000000e+00> : vector<8x8xf32>
    %56 = tpu.matmul %53, %54, %cst_24 {dimension_numbers = #tpu.dot_dimension_numbers<[1], [1], [0], [0], [0, 0, 1, 0], [], []>} : vector<8x8xf32>, vector<8x8xf32>, vector<8x8xf32> -> vector<8x8xf32>
    %cst_25 = arith.constant 0.353553385 : f32
    %57 = vector.broadcast %cst_25 : f32 to vector<8x8xf32>
    %58 = arith.mulf %56, %57 : vector<8x8xf32>
    %cst_26 = arith.constant dense<0xFF800000> : vector<8xf32>
    %59 = vector.multi_reduction <maximumf>, %58, %cst_26 [1] : vector<8x8xf32> to vector<8xf32>
    %60 = vector.shape_cast %59 : vector<8xf32> to vector<8x1xf32>
    %61 = vector.broadcast %60 : vector<8x1xf32> to vector<8x8xf32>
    %62 = arith.subf %58, %61 : vector<8x8xf32>
    %63 = math.exp %62 : vector<8x8xf32>
    %cst_27 = arith.constant dense<0.000000e+00> : vector<8xf32>
    %64 = vector.multi_reduction <add>, %63, %cst_27 [1] : vector<8x8xf32> to vector<8xf32>
    %65 = vector.shape_cast %64 : vector<8xf32> to vector<8x1xf32>
    %66 = tpu.reciprocal %65 {approx = true} : vector<8x1xf32> -> vector<8x1xf32>
    %67 = vector.broadcast %66 : vector<8x1xf32> to vector<8x8xf32>
    %68 = arith.mulf %63, %67 : vector<8x8xf32>
    %cst_28 = arith.constant dense<0.000000e+00> : vector<8x8xf32>
    %69 = tpu.matmul %68, %55, %cst_28 {dimension_numbers = #tpu.dot_dimension_numbers<[1], [0], [0], [1], [0, 0, 1, 1], [], []>} : vector<8x8xf32>, vector<8x8xf32>, vector<8x8xf32> -> vector<8x8xf32>
    %70 = vector.extract_strided_slice %31 {offsets = [8, 0], sizes = [8, 32], strides = [1, 1]} : vector<32x32xf32> to vector<8x32xf32>
    %cst_29 = arith.constant dense<0.000000e+00> : vector<8x32xf32>
    %71 = tpu.matmul %69, %70, %cst_29 {dimension_numbers = #tpu.dot_dimension_numbers<[1], [0], [0], [1], [0, 0, 1, 1], [], []>} : vector<8x8xf32>, vector<8x32xf32>, vector<8x32xf32> -> vector<8x32xf32>
    %72 = arith.addf %52, %71 : vector<8x32xf32>
    %73 = vector.extract_strided_slice %30 {offsets = [0, 16], sizes = [8, 8], strides = [1, 1]} : vector<8x96xf32> to vector<8x8xf32>
    %74 = vector.extract_strided_slice %30 {offsets = [0, 48], sizes = [8, 8], strides = [1, 1]} : vector<8x96xf32> to vector<8x8xf32>
    %75 = vector.extract_strided_slice %30 {offsets = [0, 80], sizes = [8, 8], strides = [1, 1]} : vector<8x96xf32> to vector<8x8xf32>
    %cst_30 = arith.constant dense<0.000000e+00> : vector<8x8xf32>
    %76 = tpu.matmul %73, %74, %cst_30 {dimension_numbers = #tpu.dot_dimension_numbers<[1], [1], [0], [0], [0, 0, 1, 0], [], []>} : vector<8x8xf32>, vector<8x8xf32>, vector<8x8xf32> -> vector<8x8xf32>
    %cst_31 = arith.constant 0.353553385 : f32
    %77 = vector.broadcast %cst_31 : f32 to vector<8x8xf32>
    %78 = arith.mulf %76, %77 : vector<8x8xf32>
    %cst_32 = arith.constant dense<0xFF800000> : vector<8xf32>
    %79 = vector.multi_reduction <maximumf>, %78, %cst_32 [1] : vector<8x8xf32> to vector<8xf32>
    %80 = vector.shape_cast %79 : vector<8xf32> to vector<8x1xf32>
    %81 = vector.broadcast %80 : vector<8x1xf32> to vector<8x8xf32>
    %82 = arith.subf %78, %81 : vector<8x8xf32>
    %83 = math.exp %82 : vector<8x8xf32>
    %cst_33 = arith.constant dense<0.000000e+00> : vector<8xf32>
    %84 = vector.multi_reduction <add>, %83, %cst_33 [1] : vector<8x8xf32> to vector<8xf32>
    %85 = vector.shape_cast %84 : vector<8xf32> to vector<8x1xf32>
    %86 = tpu.reciprocal %85 {approx = true} : vector<8x1xf32> -> vector<8x1xf32>
    %87 = vector.broadcast %86 : vector<8x1xf32> to vector<8x8xf32>
    %88 = arith.mulf %83, %87 : vector<8x8xf32>
    %cst_34 = arith.constant dense<0.000000e+00> : vector<8x8xf32>
    %89 = tpu.matmul %88, %75, %cst_34 {dimension_numbers = #tpu.dot_dimension_numbers<[1], [0], [0], [1], [0, 0, 1, 1], [], []>} : vector<8x8xf32>, vector<8x8xf32>, vector<8x8xf32> -> vector<8x8xf32>
    %90 = vector.extract_strided_slice %31 {offsets = [16, 0], sizes = [8, 32], strides = [1, 1]} : vector<32x32xf32> to vector<8x32xf32>
    %cst_35 = arith.constant dense<0.000000e+00> : vector<8x32xf32>
    %91 = tpu.matmul %89, %90, %cst_35 {dimension_numbers = #tpu.dot_dimension_numbers<[1], [0], [0], [1], [0, 0, 1, 1], [], []>} : vector<8x8xf32>, vector<8x32xf32>, vector<8x32xf32> -> vector<8x32xf32>
    %92 = arith.addf %72, %91 : vector<8x32xf32>
    %93 = vector.extract_strided_slice %30 {offsets = [0, 24], sizes = [8, 8], strides = [1, 1]} : vector<8x96xf32> to vector<8x8xf32>
    %94 = vector.extract_strided_slice %30 {offsets = [0, 56], sizes = [8, 8], strides = [1, 1]} : vector<8x96xf32> to vector<8x8xf32>
    %95 = vector.extract_strided_slice %30 {offsets = [0, 88], sizes = [8, 8], strides = [1, 1]} : vector<8x96xf32> to vector<8x8xf32>
    %cst_36 = arith.constant dense<0.000000e+00> : vector<8x8xf32>
    %96 = tpu.matmul %93, %94, %cst_36 {dimension_numbers = #tpu.dot_dimension_numbers<[1], [1], [0], [0], [0, 0, 1, 0], [], []>} : vector<8x8xf32>, vector<8x8xf32>, vector<8x8xf32> -> vector<8x8xf32>
    %cst_37 = arith.constant 0.353553385 : f32
    %97 = vector.broadcast %cst_37 : f32 to vector<8x8xf32>
    %98 = arith.mulf %96, %97 : vector<8x8xf32>
    %cst_38 = arith.constant dense<0xFF800000> : vector<8xf32>
    %99 = vector.multi_reduction <maximumf>, %98, %cst_38 [1] : vector<8x8xf32> to vector<8xf32>
    %100 = vector.shape_cast %99 : vector<8xf32> to vector<8x1xf32>
    %101 = vector.broadcast %100 : vector<8x1xf32> to vector<8x8xf32>
    %102 = arith.subf %98, %101 : vector<8x8xf32>
    %103 = math.exp %102 : vector<8x8xf32>
    %cst_39 = arith.constant dense<0.000000e+00> : vector<8xf32>
    %104 = vector.multi_reduction <add>, %103, %cst_39 [1] : vector<8x8xf32> to vector<8xf32>
    %105 = vector.shape_cast %104 : vector<8xf32> to vector<8x1xf32>
    %106 = tpu.reciprocal %105 {approx = true} : vector<8x1xf32> -> vector<8x1xf32>
    %107 = vector.broadcast %106 : vector<8x1xf32> to vector<8x8xf32>
    %108 = arith.mulf %103, %107 : vector<8x8xf32>
    %cst_40 = arith.constant dense<0.000000e+00> : vector<8x8xf32>
    %109 = tpu.matmul %108, %95, %cst_40 {dimension_numbers = #tpu.dot_dimension_numbers<[1], [0], [0], [1], [0, 0, 1, 1], [], []>} : vector<8x8xf32>, vector<8x8xf32>, vector<8x8xf32> -> vector<8x8xf32>
    %110 = vector.extract_strided_slice %31 {offsets = [24, 0], sizes = [8, 32], strides = [1, 1]} : vector<32x32xf32> to vector<8x32xf32>
    %cst_41 = arith.constant dense<0.000000e+00> : vector<8x32xf32>
    %111 = tpu.matmul %109, %110, %cst_41 {dimension_numbers = #tpu.dot_dimension_numbers<[1], [0], [0], [1], [0, 0, 1, 1], [], []>} : vector<8x8xf32>, vector<8x32xf32>, vector<8x32xf32> -> vector<8x32xf32>
    %112 = arith.addf %92, %111 : vector<8x32xf32>
    %c0_42 = arith.constant 0 : index
    %c0_43 = arith.constant 0 : index
    %113 = vector.load %arg7[%c0_42, %c0_43] : memref<1x32xf32, #tpu.memory_space<vmem>>, vector<1x32xf32>
    %114 = vector.broadcast %113 : vector<1x32xf32> to vector<8x32xf32>
    %115 = arith.addf %112, %114 : vector<8x32xf32>
    %c0_44 = arith.constant 0 : index
    %c0_45 = arith.constant 0 : index
    %c0_46 = arith.constant 0 : index
    %116 = vector.load %arg15[%c0_44, %c0_45, %c0_46] : memref<1x8x32xf32, #tpu.memory_space<vmem>>, vector<1x8x32xf32>
    %117 = vector.shape_cast %116 : vector<1x8x32xf32> to vector<8x32xf32>
    %118 = vector.shape_cast %115 : vector<8x32xf32> to vector<1x8x32xf32>
    tpu.vector_store %arg15[%c0_44, %c0_45, %c0_46], %118 {strides = array<i32>} : memref<1x8x32xf32, #tpu.memory_space<vmem>>, vector<1x8x32xf32>,
    %c0_47 = arith.constant 0 : index
    %c0_48 = arith.constant 0 : index
    %119 = vector.load %arg8[%c0_47, %c0_48] : memref<1x32xf32, #tpu.memory_space<vmem>>, vector<1x32xf32>
    %c0_49 = arith.constant 0 : index
    %c0_50 = arith.constant 0 : index
    %120 = vector.load %arg9[%c0_49, %c0_50] : memref<1x32xf32, #tpu.memory_space<vmem>>, vector<1x32xf32>
    %cst_51 = arith.constant dense<0.000000e+00> : vector<8xf32>
    %121 = vector.multi_reduction <add>, %115, %cst_51 [1] : vector<8x32xf32> to vector<8xf32>
    %122 = vector.shape_cast %121 : vector<8xf32> to vector<8x1xf32>
    %cst_52 = arith.constant 3.200000e+01 : f32
    %123 = vector.broadcast %cst_52 : f32 to vector<8x1xf32>
    %124 = arith.divf %122, %123 : vector<8x1xf32>
    %125 = vector.broadcast %124 : vector<8x1xf32> to vector<8x32xf32>
    %126 = arith.subf %115, %125 : vector<8x32xf32>
    %127 = arith.mulf %126, %126 : vector<8x32xf32>
    %cst_53 = arith.constant dense<0.000000e+00> : vector<8xf32>
    %128 = vector.multi_reduction <add>, %127, %cst_53 [1] : vector<8x32xf32> to vector<8xf32>
    %129 = vector.shape_cast %128 : vector<8xf32> to vector<8x1xf32>
    %cst_54 = arith.constant 3.200000e+01 : f32
    %130 = vector.broadcast %cst_54 : f32 to vector<8x1xf32>
    %131 = arith.divf %129, %130 : vector<8x1xf32>
    %132 = vector.broadcast %124 : vector<8x1xf32> to vector<8x32xf32>
    %133 = arith.subf %115, %132 : vector<8x32xf32>
    %cst_55 = arith.constant 9.99999974E-6 : f32
    %134 = vector.broadcast %cst_55 : f32 to vector<8x1xf32>
    %135 = arith.addf %131, %134 : vector<8x1xf32>
    %136 = math.rsqrt %135 : vector<8x1xf32>
    %137 = vector.broadcast %136 : vector<8x1xf32> to vector<8x32xf32>
    %138 = arith.mulf %133, %137 : vector<8x32xf32>
    %139 = vector.broadcast %119 : vector<1x32xf32> to vector<8x32xf32>
    %140 = arith.mulf %138, %139 : vector<8x32xf32>
    %141 = vector.broadcast %120 : vector<1x32xf32> to vector<8x32xf32>
    %142 = arith.addf %140, %141 : vector<8x32xf32>
    %c0_56 = arith.constant 0 : index
    %c0_57 = arith.constant 0 : index
    %c0_58 = arith.constant 0 : index
    %143 = vector.load %arg16[%c0_56, %c0_57, %c0_58] : memref<1x8x32xf32, #tpu.memory_space<vmem>>, vector<1x8x32xf32>
    %144 = vector.shape_cast %143 : vector<1x8x32xf32> to vector<8x32xf32>
    %145 = vector.shape_cast %142 : vector<8x32xf32> to vector<1x8x32xf32>
    tpu.vector_store %arg16[%c0_56, %c0_57, %c0_58], %145 {strides = array<i32>} : memref<1x8x32xf32, #tpu.memory_space<vmem>>, vector<1x8x32xf32>,
    %c0_59 = arith.constant 0 : index
    %c0_60 = arith.constant 0 : index
    %146 = vector.load %arg10[%c0_59, %c0_60] : memref<32x4xf32, #tpu.memory_space<vmem>>, vector<32x4xf32>
    %cst_61 = arith.constant dense<0.000000e+00> : vector<8x4xf32>
    %147 = tpu.matmul %142, %146, %cst_61 {dimension_numbers = #tpu.dot_dimension_numbers<[1], [0], [0], [1], [0, 0, 1, 1], [], []>} : vector<8x32xf32>, vector<32x4xf32>, vector<8x4xf32> -> vector<8x4xf32>
    %c0_62 = arith.constant 0 : index
    %c0_63 = arith.constant 0 : index
    %c0_64 = arith.constant 0 : index
    %148 = vector.load %arg17[%c0_62, %c0_63, %c0_64] : memref<1x8x4xf32, #tpu.memory_space<vmem>>, vector<1x8x4xf32>
    %149 = vector.shape_cast %148 : vector<1x8x4xf32> to vector<8x4xf32>
    %150 = vector.shape_cast %147 : vector<8x4xf32> to vector<1x8x4xf32>
    tpu.vector_store %arg17[%c0_62, %c0_63, %c0_64], %150 {strides = array<i32>} : memref<1x8x4xf32, #tpu.memory_space<vmem>>, vector<1x8x4xf32>,
    %c0_65 = arith.constant 0 : index
    %c0_66 = arith.constant 0 : index
    %151 = vector.load %arg11[%c0_65, %c0_66] : memref<32x64xf32, #tpu.memory_space<vmem>>, vector<32x64xf32>
    %cst_67 = arith.constant dense<0.000000e+00> : vector<8x64xf32>
    %152 = tpu.matmul %142, %151, %cst_67 {dimension_numbers = #tpu.dot_dimension_numbers<[1], [0], [0], [1], [0, 0, 1, 1], [], []>} : vector<8x32xf32>, vector<32x64xf32>, vector<8x64xf32> -> vector<8x64xf32>
    %c0_68 = arith.constant 0 : index
    %c0_69 = arith.constant 0 : index
    %153 = vector.load %arg12[%c0_68, %c0_69] : memref<1x64xf32, #tpu.memory_space<vmem>>, vector<1x64xf32>
    %154 = vector.broadcast %153 : vector<1x64xf32> to vector<8x64xf32>
    %155 = arith.addf %152, %154 : vector<8x64xf32>
    %cst_70 = arith.constant 5.000000e-01 : f32
    %156 = vector.broadcast %cst_70 : f32 to vector<8x64xf32>
    %157 = arith.mulf %156, %155 : vector<8x64xf32>
    %cst_71 = arith.constant 4.471500e-02 : f32
    %158 = vector.broadcast %cst_71 : f32 to vector<8x64xf32>
    %159 = arith.mulf %158, %155 : vector<8x64xf32>
    %160 = arith.mulf %159, %155 : vector<8x64xf32>
    %161 = arith.mulf %160, %155 : vector<8x64xf32>
    %162 = arith.addf %155, %161 : vector<8x64xf32>
    %cst_72 = arith.constant 0.797884583 : f32
    %163 = vector.broadcast %cst_72 : f32 to vector<8x64xf32>
    %164 = arith.mulf %163, %162 : vector<8x64xf32>
    %165 = math.tanh %164 : vector<8x64xf32>
    %cst_73 = arith.constant 1.000000e+00 : f32
    %166 = vector.broadcast %cst_73 : f32 to vector<8x64xf32>
    %167 = arith.addf %166, %165 : vector<8x64xf32>
    %168 = arith.mulf %157, %167 : vector<8x64xf32>
    %c0_74 = arith.constant 0 : index
    %c0_75 = arith.constant 0 : index
    %169 = vector.load %arg13[%c0_74, %c0_75] : memref<64x32xf32, #tpu.memory_space<vmem>>, vector<64x32xf32>
    %cst_76 = arith.constant dense<0.000000e+00> : vector<8x32xf32>
    %170 = tpu.matmul %168, %169, %cst_76 {dimension_numbers = #tpu.dot_dimension_numbers<[1], [0], [0], [1], [0, 0, 1, 1], [], []>} : vector<8x64xf32>, vector<64x32xf32>, vector<8x32xf32> -> vector<8x32xf32>
    %c0_77 = arith.constant 0 : index
    %c0_78 = arith.constant 0 : index
    %171 = vector.load %arg14[%c0_77, %c0_78] : memref<1x32xf32, #tpu.memory_space<vmem>>, vector<1x32xf32>
    %172 = vector.broadcast %171 : vector<1x32xf32> to vector<8x32xf32>
    %173 = arith.addf %170, %172 : vector<8x32xf32>
    %c0_79 = arith.constant 0 : index
    %c0_80 = arith.constant 0 : index
    %c0_81 = arith.constant 0 : index
    %174 = vector.load %arg18[%c0_79, %c0_80, %c0_81] : memref<1x8x32xf32, #tpu.memory_space<vmem>>, vector<1x8x32xf32>
    %175 = vector.shape_cast %174 : vector<1x8x32xf32> to vector<8x32xf32>
    %176 = vector.shape_cast %173 : vector<8x32xf32> to vector<1x8x32xf32>
    tpu.vector_store %arg18[%c0_79, %c0_80, %c0_81], %176 {strides = array<i32>} : memref<1x8x32xf32, #tpu.memory_space<vmem>>, vector<1x8x32xf32>,
    return
  }
  func.func @transform_0(%arg0: i32) -> (i32, i32, i32) {
    %c0_i32 = arith.constant 0 : i32
    %c0_i32_0 = arith.constant 0 : i32
    %c0_i32_1 = arith.constant 0 : i32
    return %arg0, %c0_i32, %c0_i32_0 : i32, i32, i32
  }
  func.func @transform_1(%arg0: i32) -> (i32, i32) {
    %c0_i32 = arith.constant 0 : i32
    %c0_i32_0 = arith.constant 0 : i32
    %c0_i32_1 = arith.constant 0 : i32
    return %c0_i32, %c0_i32_0 : i32, i32
  }
  func.func @transform_2(%arg0: i32) -> (i32, i32) {
    %c0_i32 = arith.constant 0 : i32
    %c0_i32_0 = arith.constant 0 : i32
    %c0_i32_1 = arith.constant 0 : i32
    return %c0_i32, %c0_i32_0 : i32, i32
  }
  func.func @transform_3(%arg0: i32) -> (i32, i32) {
    %c0_i32 = arith.constant 0 : i32
    %c0_i32_0 = arith.constant 0 : i32
    %c0_i32_1 = arith.constant 0 : i32
    return %c0_i32, %c0_i32_0 : i32, i32
  }
  func.func @transform_4(%arg0: i32) -> (i32, i32) {
    %c0_i32 = arith.constant 0 : i32
    %c0_i32_0 = arith.constant 0 : i32
    %c0_i32_1 = arith.constant 0 : i32
    return %c0_i32, %c0_i32_0 : i32, i32
  }
  func.func @transform_5(%arg0: i32) -> (i32, i32) {
    %c0_i32 = arith.constant 0 : i32
    %c0_i32_0 = arith.constant 0 : i32
    %c0_i32_1 = arith.constant 0 : i32
    return %c0_i32, %c0_i32_0 : i32, i32
  }
  func.func @transform_6(%arg0: i32) -> (i32, i32) {
    %c0_i32 = arith.constant 0 : i32
    %c0_i32_0 = arith.constant 0 : i32
    %c0_i32_1 = arith.constant 0 : i32
    return %c0_i32, %c0_i32_0 : i32, i32
  }
  func.func @transform_7(%arg0: i32) -> (i32, i32) {
    %c0_i32 = arith.constant 0 : i32
    %c0_i32_0 = arith.constant 0 : i32
    %c0_i32_1 = arith.constant 0 : i32
    return %c0_i32, %c0_i32_0 : i32, i32
  }
  func.func @transform_8(%arg0: i32) -> (i32, i32) {
    %c0_i32 = arith.constant 0 : i32
    %c0_i32_0 = arith.constant 0 : i32
    %c0_i32_1 = arith.constant 0 : i32
    return %c0_i32, %c0_i32_0 : i32, i32
  }
  func.func @transform_9(%arg0: i32) -> (i32, i32) {
    %c0_i32 = arith.constant 0 : i32
    %c0_i32_0 = arith.constant 0 : i32
    %c0_i32_1 = arith.constant 0 : i32
    return %c0_i32, %c0_i32_0 : i32, i32
  }
  func.func @transform_10(%arg0: i32) -> (i32, i32) {
    %c0_i32 = arith.constant 0 : i32
    %c0_i32_0 = arith.constant 0 : i32
    %c0_i32_1 = arith.constant 0 : i32
    return %c0_i32, %c0_i32_0 : i32, i32
  }
  func.func @transform_11(%arg0: i32) -> (i32, i32) {
    %c0_i32 = arith.constant 0 : i32
    %c0_i32_0 = arith.constant 0 : i32
    %c0_i32_1 = arith.constant 0 : i32
    return %c0_i32, %c0_i32_0 : i32, i32
  }
  func.func @transform_12(%arg0: i32) -> (i32, i32) {
    %c0_i32 = arith.constant 0 : i32
    %c0_i32_0 = arith.constant 0 : i32
    %c0_i32_1 = arith.constant 0 : i32
    return %c0_i32, %c0_i32_0 : i32, i32
  }
  func.func @transform_13(%arg0: i32) -> (i32, i32) {
    %c0_i32 = arith.constant 0 : i32
    %c0_i32_0 = arith.constant 0 : i32
    %c0_i32_1 = arith.constant 0 : i32
    return %c0_i32, %c0_i32_0 : i32, i32
  }
  func.func @transform_14(%arg0: i32) -> (i32, i32, i32) {
    %c0_i32 = arith.constant 0 : i32
    %c0_i32_0 = arith.constant 0 : i32
    %c0_i32_1 = arith.constant 0 : i32
    return %arg0, %c0_i32, %c0_i32_0 : i32, i32, i32
  }
  func.func @transform_15(%arg0: i32) -> (i32, i32, i32) {
    %c0_i32 = arith.constant 0 : i32
    %c0_i32_0 = arith.constant 0 : i32
    %c0_i32_1 = arith.constant 0 : i32
    return %arg0, %c0_i32, %c0_i32_0 : i32, i32, i32
  }
  func.func @transform_16(%arg0: i32) -> (i32, i32, i32) {
    %c0_i32 = arith.constant 0 : i32
    %c0_i32_0 = arith.constant 0 : i32
    %c0_i32_1 = arith.constant 0 : i32
    return %arg0, %c0_i32, %c0_i32_0 : i32, i32, i32
  }
  func.func @transform_17(%arg0: i32) -> (i32, i32, i32) {
    %c0_i32 = arith.constant 0 : i32
    %c0_i32_0 = arith.constant 0 : i32
    %c0_i32_1 = arith.constant 0 : i32
    return %arg0, %c0_i32, %c0_i32_0 : i32, i32, i32
  }
}

module attributes {stable_mosaic.version = 11 : i64} {
  func.func @_moe_expert_kernel(%arg0: i32, %arg1: i32, %arg2: memref<4x8xi32, #tpu.memory_space<smem>>, %arg3: memref<1x1x8x1xf32, #tpu.memory_space<vmem>>, %arg4: memref<16x32xf32, #tpu.memory_space<vmem>>, %arg5: memref<1x1x32x64xf32, #tpu.memory_space<vmem>>, %arg6: memref<1x1x1x64xf32, #tpu.memory_space<vmem>>, %arg7: memref<1x1x64x32xf32, #tpu.memory_space<vmem>>, %arg8: memref<1x1x1x32xf32, #tpu.memory_space<vmem>>, %arg9: memref<1x16x32xf32, #tpu.memory_space<vmem>>, %arg10: memref<8x32xf32, #tpu.memory_space<vmem>>, %arg11: memref<8x32xf32, #tpu.memory_space<vmem>>) attributes {dimension_semantics = [#tpu.dimension_semantics<parallel>, #tpu.dimension_semantics<arbitrary>], iteration_bounds = array<i64: 2, 2>, scalar_prefetch = 1 : i64, scratch_operands = 2 : i64, tpu.core_type = #tpu.core_type<tc>, window_params = [{transform_indices = @transform_0, window_bounds = array<i64: 1, 1, 8, 1>}, {pipeline_mode = #tpu.pipeline_mode<synchronous>, transform_indices = @transform_1, window_bounds = array<i64: 16, 32>}, {transform_indices = @transform_2, window_bounds = array<i64: 1, 1, 32, 64>}, {transform_indices = @transform_3, window_bounds = array<i64: 1, 1, 1, 64>}, {transform_indices = @transform_4, window_bounds = array<i64: 1, 1, 64, 32>}, {transform_indices = @transform_5, window_bounds = array<i64: 1, 1, 1, 32>}, {transform_indices = @transform_6, window_bounds = array<i64: 1, 16, 32>}]} {
    %c2_i32 = arith.constant 2 : i32
    %0 = arith.muli %arg0, %c2_i32 : i32
    %1 = arith.addi %0, %arg1 : i32
    %c0_i32 = arith.constant 0 : i32
    %2 = arith.cmpi eq, %arg1, %c0_i32 : i32
    %3 = arith.extui %2 : i1 to i32
    %c0_i32_0 = arith.constant 0 : i32
    %4 = arith.cmpi ne, %3, %c0_i32_0 : i32
    scf.if %4 {
      %cst_113 = arith.constant 0.000000e+00 : f32
      %206 = vector.broadcast %cst_113 : f32 to vector<1x16x32xf32>
      %c0_114 = arith.constant 0 : index
      %c0_115 = arith.constant 0 : index
      %c0_116 = arith.constant 0 : index
      %207 = vector.load %arg9[%c0_114, %c0_115, %c0_116] : memref<1x16x32xf32, #tpu.memory_space<vmem>>, vector<1x16x32xf32>
      tpu.vector_store %arg9[%c0_114, %c0_115, %c0_116], %206 {strides = array<i32>} : memref<1x16x32xf32, #tpu.memory_space<vmem>>, vector<1x16x32xf32>,
    } else {
    }
    %c0_i32_1 = arith.constant 0 : i32
    %5 = arith.index_cast %1 : i32 to index
    %6 = arith.index_cast %c0_i32_1 : i32 to index
    %7 = memref.load %arg2[%5, %6] : memref<4x8xi32, #tpu.memory_space<smem>>
    %8 = arith.index_cast %7 : i32 to index
    %c0 = arith.constant 0 : index
    %9 = vector.load %arg4[%8, %c0] : memref<16x32xf32, #tpu.memory_space<vmem>>, vector<1x32xf32>
    %10 = arith.index_cast %c0_i32_1 : i32 to index
    %c0_2 = arith.constant 0 : index
    %11 = vector.load %arg10[%10, %c0_2] : memref<8x32xf32, #tpu.memory_space<vmem>>, vector<1x32xf32>
    tpu.vector_store %arg10[%10, %c0_2], %9 {strides = array<i32>} : memref<8x32xf32, #tpu.memory_space<vmem>>, vector<1x32xf32>,
    %c1_i32 = arith.constant 1 : i32
    %12 = arith.index_cast %1 : i32 to index
    %13 = arith.index_cast %c1_i32 : i32 to index
    %14 = memref.load %arg2[%12, %13] : memref<4x8xi32, #tpu.memory_space<smem>>
    %15 = arith.index_cast %14 : i32 to index
    %c0_3 = arith.constant 0 : index
    %16 = vector.load %arg4[%15, %c0_3] : memref<16x32xf32, #tpu.memory_space<vmem>>, vector<1x32xf32>
    %17 = arith.index_cast %c1_i32 : i32 to index
    %c0_4 = arith.constant 0 : index
    %18 = vector.load %arg10[%17, %c0_4] : memref<8x32xf32, #tpu.memory_space<vmem>>, vector<1x32xf32>
    tpu.vector_store %arg10[%17, %c0_4], %16 {strides = array<i32>} : memref<8x32xf32, #tpu.memory_space<vmem>>, vector<1x32xf32>,
    %c2_i32_5 = arith.constant 2 : i32
    %19 = arith.index_cast %1 : i32 to index
    %20 = arith.index_cast %c2_i32_5 : i32 to index
    %21 = memref.load %arg2[%19, %20] : memref<4x8xi32, #tpu.memory_space<smem>>
    %22 = arith.index_cast %21 : i32 to index
    %c0_6 = arith.constant 0 : index
    %23 = vector.load %arg4[%22, %c0_6] : memref<16x32xf32, #tpu.memory_space<vmem>>, vector<1x32xf32>
    %24 = arith.index_cast %c2_i32_5 : i32 to index
    %c0_7 = arith.constant 0 : index
    %25 = vector.load %arg10[%24, %c0_7] : memref<8x32xf32, #tpu.memory_space<vmem>>, vector<1x32xf32>
    tpu.vector_store %arg10[%24, %c0_7], %23 {strides = array<i32>} : memref<8x32xf32, #tpu.memory_space<vmem>>, vector<1x32xf32>,
    %c3_i32 = arith.constant 3 : i32
    %26 = arith.index_cast %1 : i32 to index
    %27 = arith.index_cast %c3_i32 : i32 to index
    %28 = memref.load %arg2[%26, %27] : memref<4x8xi32, #tpu.memory_space<smem>>
    %29 = arith.index_cast %28 : i32 to index
    %c0_8 = arith.constant 0 : index
    %30 = vector.load %arg4[%29, %c0_8] : memref<16x32xf32, #tpu.memory_space<vmem>>, vector<1x32xf32>
    %31 = arith.index_cast %c3_i32 : i32 to index
    %c0_9 = arith.constant 0 : index
    %32 = vector.load %arg10[%31, %c0_9] : memref<8x32xf32, #tpu.memory_space<vmem>>, vector<1x32xf32>
    tpu.vector_store %arg10[%31, %c0_9], %30 {strides = array<i32>} : memref<8x32xf32, #tpu.memory_space<vmem>>, vector<1x32xf32>,
    %c4_i32 = arith.constant 4 : i32
    %33 = arith.index_cast %1 : i32 to index
    %34 = arith.index_cast %c4_i32 : i32 to index
    %35 = memref.load %arg2[%33, %34] : memref<4x8xi32, #tpu.memory_space<smem>>
    %36 = arith.index_cast %35 : i32 to index
    %c0_10 = arith.constant 0 : index
    %37 = vector.load %arg4[%36, %c0_10] : memref<16x32xf32, #tpu.memory_space<vmem>>, vector<1x32xf32>
    %38 = arith.index_cast %c4_i32 : i32 to index
    %c0_11 = arith.constant 0 : index
    %39 = vector.load %arg10[%38, %c0_11] : memref<8x32xf32, #tpu.memory_space<vmem>>, vector<1x32xf32>
    tpu.vector_store %arg10[%38, %c0_11], %37 {strides = array<i32>} : memref<8x32xf32, #tpu.memory_space<vmem>>, vector<1x32xf32>,
    %c5_i32 = arith.constant 5 : i32
    %40 = arith.index_cast %1 : i32 to index
    %41 = arith.index_cast %c5_i32 : i32 to index
    %42 = memref.load %arg2[%40, %41] : memref<4x8xi32, #tpu.memory_space<smem>>
    %43 = arith.index_cast %42 : i32 to index
    %c0_12 = arith.constant 0 : index
    %44 = vector.load %arg4[%43, %c0_12] : memref<16x32xf32, #tpu.memory_space<vmem>>, vector<1x32xf32>
    %45 = arith.index_cast %c5_i32 : i32 to index
    %c0_13 = arith.constant 0 : index
    %46 = vector.load %arg10[%45, %c0_13] : memref<8x32xf32, #tpu.memory_space<vmem>>, vector<1x32xf32>
    tpu.vector_store %arg10[%45, %c0_13], %44 {strides = array<i32>} : memref<8x32xf32, #tpu.memory_space<vmem>>, vector<1x32xf32>,
    %c6_i32 = arith.constant 6 : i32
    %47 = arith.index_cast %1 : i32 to index
    %48 = arith.index_cast %c6_i32 : i32 to index
    %49 = memref.load %arg2[%47, %48] : memref<4x8xi32, #tpu.memory_space<smem>>
    %50 = arith.index_cast %49 : i32 to index
    %c0_14 = arith.constant 0 : index
    %51 = vector.load %arg4[%50, %c0_14] : memref<16x32xf32, #tpu.memory_space<vmem>>, vector<1x32xf32>
    %52 = arith.index_cast %c6_i32 : i32 to index
    %c0_15 = arith.constant 0 : index
    %53 = vector.load %arg10[%52, %c0_15] : memref<8x32xf32, #tpu.memory_space<vmem>>, vector<1x32xf32>
    tpu.vector_store %arg10[%52, %c0_15], %51 {strides = array<i32>} : memref<8x32xf32, #tpu.memory_space<vmem>>, vector<1x32xf32>,
    %c7_i32 = arith.constant 7 : i32
    %54 = arith.index_cast %1 : i32 to index
    %55 = arith.index_cast %c7_i32 : i32 to index
    %56 = memref.load %arg2[%54, %55] : memref<4x8xi32, #tpu.memory_space<smem>>
    %57 = arith.index_cast %56 : i32 to index
    %c0_16 = arith.constant 0 : index
    %58 = vector.load %arg4[%57, %c0_16] : memref<16x32xf32, #tpu.memory_space<vmem>>, vector<1x32xf32>
    %59 = arith.index_cast %c7_i32 : i32 to index
    %c0_17 = arith.constant 0 : index
    %60 = vector.load %arg10[%59, %c0_17] : memref<8x32xf32, #tpu.memory_space<vmem>>, vector<1x32xf32>
    tpu.vector_store %arg10[%59, %c0_17], %58 {strides = array<i32>} : memref<8x32xf32, #tpu.memory_space<vmem>>, vector<1x32xf32>,
    %c8_i32 = arith.constant 8 : i32
    %c0_18 = arith.constant 0 : index
    %c0_19 = arith.constant 0 : index
    %61 = vector.load %arg10[%c0_18, %c0_19] : memref<8x32xf32, #tpu.memory_space<vmem>>, vector<8x32xf32>
    %c0_20 = arith.constant 0 : index
    %c0_21 = arith.constant 0 : index
    %c0_22 = arith.constant 0 : index
    %c0_23 = arith.constant 0 : index
    %62 = vector.load %arg5[%c0_20, %c0_21, %c0_22, %c0_23] : memref<1x1x32x64xf32, #tpu.memory_space<vmem>>, vector<1x1x32x64xf32>
    %63 = vector.shape_cast %62 : vector<1x1x32x64xf32> to vector<32x64xf32>
    %cst = arith.constant dense<0.000000e+00> : vector<8x64xf32>
    %64 = tpu.matmul %61, %63, %cst {dimension_numbers = #tpu.dot_dimension_numbers<[1], [0], [0], [1], [0, 0, 1, 1], [], []>} : vector<8x32xf32>, vector<32x64xf32>, vector<8x64xf32> -> vector<8x64xf32>
    %c0_24 = arith.constant 0 : index
    %c0_25 = arith.constant 0 : index
    %c0_26 = arith.constant 0 : index
    %c0_27 = arith.constant 0 : index
    %65 = vector.load %arg6[%c0_24, %c0_25, %c0_26, %c0_27] : memref<1x1x1x64xf32, #tpu.memory_space<vmem>>, vector<1x1x1x64xf32>
    %66 = vector.shape_cast %65 : vector<1x1x1x64xf32> to vector<1x64xf32>
    %67 = vector.broadcast %66 : vector<1x64xf32> to vector<8x64xf32>
    %68 = arith.addf %64, %67 : vector<8x64xf32>
    %cst_28 = arith.constant 5.000000e-01 : f32
    %69 = vector.broadcast %cst_28 : f32 to vector<8x64xf32>
    %70 = arith.mulf %69, %68 : vector<8x64xf32>
    %cst_29 = arith.constant 4.471500e-02 : f32
    %71 = vector.broadcast %cst_29 : f32 to vector<8x64xf32>
    %72 = arith.mulf %71, %68 : vector<8x64xf32>
    %73 = arith.mulf %72, %68 : vector<8x64xf32>
    %74 = arith.mulf %73, %68 : vector<8x64xf32>
    %75 = arith.addf %68, %74 : vector<8x64xf32>
    %cst_30 = arith.constant 0.797884583 : f32
    %76 = vector.broadcast %cst_30 : f32 to vector<8x64xf32>
    %77 = arith.mulf %76, %75 : vector<8x64xf32>
    %78 = math.tanh %77 : vector<8x64xf32>
    %cst_31 = arith.constant 1.000000e+00 : f32
    %79 = vector.broadcast %cst_31 : f32 to vector<8x64xf32>
    %80 = arith.addf %79, %78 : vector<8x64xf32>
    %81 = arith.mulf %70, %80 : vector<8x64xf32>
    %c0_32 = arith.constant 0 : index
    %c0_33 = arith.constant 0 : index
    %c0_34 = arith.constant 0 : index
    %c0_35 = arith.constant 0 : index
    %82 = vector.load %arg7[%c0_32, %c0_33, %c0_34, %c0_35] : memref<1x1x64x32xf32, #tpu.memory_space<vmem>>, vector<1x1x64x32xf32>
    %83 = vector.shape_cast %82 : vector<1x1x64x32xf32> to vector<64x32xf32>
    %cst_36 = arith.constant dense<0.000000e+00> : vector<8x32xf32>
    %84 = tpu.matmul %81, %83, %cst_36 {dimension_numbers = #tpu.dot_dimension_numbers<[1], [0], [0], [1], [0, 0, 1, 1], [], []>} : vector<8x64xf32>, vector<64x32xf32>, vector<8x32xf32> -> vector<8x32xf32>
    %c0_37 = arith.constant 0 : index
    %c0_38 = arith.constant 0 : index
    %c0_39 = arith.constant 0 : index
    %c0_40 = arith.constant 0 : index
    %85 = vector.load %arg8[%c0_37, %c0_38, %c0_39, %c0_40] : memref<1x1x1x32xf32, #tpu.memory_space<vmem>>, vector<1x1x1x32xf32>
    %86 = vector.shape_cast %85 : vector<1x1x1x32xf32> to vector<1x32xf32>
    %87 = vector.broadcast %86 : vector<1x32xf32> to vector<8x32xf32>
    %88 = arith.addf %84, %87 : vector<8x32xf32>
    %c0_41 = arith.constant 0 : index
    %c0_42 = arith.constant 0 : index
    %c0_43 = arith.constant 0 : index
    %c0_44 = arith.constant 0 : index
    %89 = vector.load %arg3[%c0_41, %c0_42, %c0_43, %c0_44] : memref<1x1x8x1xf32, #tpu.memory_space<vmem>>, vector<1x1x8x1xf32>
    %90 = vector.shape_cast %89 : vector<1x1x8x1xf32> to vector<8x1xf32>
    %91 = vector.broadcast %90 : vector<8x1xf32> to vector<8x32xf32>
    %92 = arith.mulf %88, %91 : vector<8x32xf32>
    %c0_45 = arith.constant 0 : index
    %c0_46 = arith.constant 0 : index
    %93 = vector.load %arg11[%c0_45, %c0_46] : memref<8x32xf32, #tpu.memory_space<vmem>>, vector<8x32xf32>
    tpu.vector_store %arg11[%c0_45, %c0_46], %92 {strides = array<i32>} : memref<8x32xf32, #tpu.memory_space<vmem>>, vector<8x32xf32>,
    %c0_i32_47 = arith.constant 0 : i32
    %c0_i32_48 = arith.constant 0 : i32
    %94 = arith.index_cast %1 : i32 to index
    %95 = arith.index_cast %c0_i32_48 : i32 to index
    %96 = memref.load %arg2[%94, %95] : memref<4x8xi32, #tpu.memory_space<smem>>
    %c0_i32_49 = arith.constant 0 : i32
    %c0_i32_50 = arith.constant 0 : i32
    %97 = tpu.memref_slice %arg9[%c0_i32_47, %c0_i32_49, %c0_i32_50] : memref<1x16x32xf32, #tpu.memory_space<vmem>> -> memref<1x16x32xf32, #tpu.memory_space<vmem>>
    %98 = tpu.memref_squeeze %97 : memref<1x16x32xf32, #tpu.memory_space<vmem>> -> memref<16x32xf32, #tpu.memory_space<vmem>>
    %99 = arith.index_cast %96 : i32 to index
    %c0_51 = arith.constant 0 : index
    %100 = vector.load %98[%99, %c0_51] : memref<16x32xf32, #tpu.memory_space<vmem>>, vector<1x32xf32>
    %101 = arith.index_cast %c0_i32_48 : i32 to index
    %c0_52 = arith.constant 0 : index
    %102 = vector.load %arg11[%101, %c0_52] : memref<8x32xf32, #tpu.memory_space<vmem>>, vector<1x32xf32>
    %103 = arith.addf %100, %102 : vector<1x32xf32>
    %c0_i32_53 = arith.constant 0 : i32
    %c0_i32_54 = arith.constant 0 : i32
    %104 = tpu.memref_slice %arg9[%c0_i32_47, %c0_i32_53, %c0_i32_54] : memref<1x16x32xf32, #tpu.memory_space<vmem>> -> memref<1x16x32xf32, #tpu.memory_space<vmem>>
    %105 = tpu.memref_squeeze %104 : memref<1x16x32xf32, #tpu.memory_space<vmem>> -> memref<16x32xf32, #tpu.memory_space<vmem>>
    %106 = arith.index_cast %96 : i32 to index
    %c0_55 = arith.constant 0 : index
    %107 = vector.load %105[%106, %c0_55] : memref<16x32xf32, #tpu.memory_space<vmem>>, vector<1x32xf32>
    tpu.vector_store %105[%106, %c0_55], %103 {strides = array<i32>} : memref<16x32xf32, #tpu.memory_space<vmem>>, vector<1x32xf32>,
    %c1_i32_56 = arith.constant 1 : i32
    %108 = arith.index_cast %1 : i32 to index
    %109 = arith.index_cast %c1_i32_56 : i32 to index
    %110 = memref.load %arg2[%108, %109] : memref<4x8xi32, #tpu.memory_space<smem>>
    %c0_i32_57 = arith.constant 0 : i32
    %c0_i32_58 = arith.constant 0 : i32
    %111 = tpu.memref_slice %arg9[%c0_i32_47, %c0_i32_57, %c0_i32_58] : memref<1x16x32xf32, #tpu.memory_space<vmem>> -> memref<1x16x32xf32, #tpu.memory_space<vmem>>
    %112 = tpu.memref_squeeze %111 : memref<1x16x32xf32, #tpu.memory_space<vmem>> -> memref<16x32xf32, #tpu.memory_space<vmem>>
    %113 = arith.index_cast %110 : i32 to index
    %c0_59 = arith.constant 0 : index
    %114 = vector.load %112[%113, %c0_59] : memref<16x32xf32, #tpu.memory_space<vmem>>, vector<1x32xf32>
    %115 = arith.index_cast %c1_i32_56 : i32 to index
    %c0_60 = arith.constant 0 : index
    %116 = vector.load %arg11[%115, %c0_60] : memref<8x32xf32, #tpu.memory_space<vmem>>, vector<1x32xf32>
    %117 = arith.addf %114, %116 : vector<1x32xf32>
    %c0_i32_61 = arith.constant 0 : i32
    %c0_i32_62 = arith.constant 0 : i32
    %118 = tpu.memref_slice %arg9[%c0_i32_47, %c0_i32_61, %c0_i32_62] : memref<1x16x32xf32, #tpu.memory_space<vmem>> -> memref<1x16x32xf32, #tpu.memory_space<vmem>>
    %119 = tpu.memref_squeeze %118 : memref<1x16x32xf32, #tpu.memory_space<vmem>> -> memref<16x32xf32, #tpu.memory_space<vmem>>
    %120 = arith.index_cast %110 : i32 to index
    %c0_63 = arith.constant 0 : index
    %121 = vector.load %119[%120, %c0_63] : memref<16x32xf32, #tpu.memory_space<vmem>>, vector<1x32xf32>
    tpu.vector_store %119[%120, %c0_63], %117 {strides = array<i32>} : memref<16x32xf32, #tpu.memory_space<vmem>>, vector<1x32xf32>,
    %c2_i32_64 = arith.constant 2 : i32
    %122 = arith.index_cast %1 : i32 to index
    %123 = arith.index_cast %c2_i32_64 : i32 to index
    %124 = memref.load %arg2[%122, %123] : memref<4x8xi32, #tpu.memory_space<smem>>
    %c0_i32_65 = arith.constant 0 : i32
    %c0_i32_66 = arith.constant 0 : i32
    %125 = tpu.memref_slice %arg9[%c0_i32_47, %c0_i32_65, %c0_i32_66] : memref<1x16x32xf32, #tpu.memory_space<vmem>> -> memref<1x16x32xf32, #tpu.memory_space<vmem>>
    %126 = tpu.memref_squeeze %125 : memref<1x16x32xf32, #tpu.memory_space<vmem>> -> memref<16x32xf32, #tpu.memory_space<vmem>>
    %127 = arith.index_cast %124 : i32 to index
    %c0_67 = arith.constant 0 : index
    %128 = vector.load %126[%127, %c0_67] : memref<16x32xf32, #tpu.memory_space<vmem>>, vector<1x32xf32>
    %129 = arith.index_cast %c2_i32_64 : i32 to index
    %c0_68 = arith.constant 0 : index
    %130 = vector.load %arg11[%129, %c0_68] : memref<8x32xf32, #tpu.memory_space<vmem>>, vector<1x32xf32>
    %131 = arith.addf %128, %130 : vector<1x32xf32>
    %c0_i32_69 = arith.constant 0 : i32
    %c0_i32_70 = arith.constant 0 : i32
    %132 = tpu.memref_slice %arg9[%c0_i32_47, %c0_i32_69, %c0_i32_70] : memref<1x16x32xf32, #tpu.memory_space<vmem>> -> memref<1x16x32xf32, #tpu.memory_space<vmem>>
    %133 = tpu.memref_squeeze %132 : memref<1x16x32xf32, #tpu.memory_space<vmem>> -> memref<16x32xf32, #tpu.memory_space<vmem>>
    %134 = arith.index_cast %124 : i32 to index
    %c0_71 = arith.constant 0 : index
    %135 = vector.load %133[%134, %c0_71] : memref<16x32xf32, #tpu.memory_space<vmem>>, vector<1x32xf32>
    tpu.vector_store %133[%134, %c0_71], %131 {strides = array<i32>} : memref<16x32xf32, #tpu.memory_space<vmem>>, vector<1x32xf32>,
    %c3_i32_72 = arith.constant 3 : i32
    %136 = arith.index_cast %1 : i32 to index
    %137 = arith.index_cast %c3_i32_72 : i32 to index
    %138 = memref.load %arg2[%136, %137] : memref<4x8xi32, #tpu.memory_space<smem>>
    %c0_i32_73 = arith.constant 0 : i32
    %c0_i32_74 = arith.constant 0 : i32
    %139 = tpu.memref_slice %arg9[%c0_i32_47, %c0_i32_73, %c0_i32_74] : memref<1x16x32xf32, #tpu.memory_space<vmem>> -> memref<1x16x32xf32, #tpu.memory_space<vmem>>
    %140 = tpu.memref_squeeze %139 : memref<1x16x32xf32, #tpu.memory_space<vmem>> -> memref<16x32xf32, #tpu.memory_space<vmem>>
    %141 = arith.index_cast %138 : i32 to index
    %c0_75 = arith.constant 0 : index
    %142 = vector.load %140[%141, %c0_75] : memref<16x32xf32, #tpu.memory_space<vmem>>, vector<1x32xf32>
    %143 = arith.index_cast %c3_i32_72 : i32 to index
    %c0_76 = arith.constant 0 : index
    %144 = vector.load %arg11[%143, %c0_76] : memref<8x32xf32, #tpu.memory_space<vmem>>, vector<1x32xf32>
    %145 = arith.addf %142, %144 : vector<1x32xf32>
    %c0_i32_77 = arith.constant 0 : i32
    %c0_i32_78 = arith.constant 0 : i32
    %146 = tpu.memref_slice %arg9[%c0_i32_47, %c0_i32_77, %c0_i32_78] : memref<1x16x32xf32, #tpu.memory_space<vmem>> -> memref<1x16x32xf32, #tpu.memory_space<vmem>>
    %147 = tpu.memref_squeeze %146 : memref<1x16x32xf32, #tpu.memory_space<vmem>> -> memref<16x32xf32, #tpu.memory_space<vmem>>
    %148 = arith.index_cast %138 : i32 to index
    %c0_79 = arith.constant 0 : index
    %149 = vector.load %147[%148, %c0_79] : memref<16x32xf32, #tpu.memory_space<vmem>>, vector<1x32xf32>
    tpu.vector_store %147[%148, %c0_79], %145 {strides = array<i32>} : memref<16x32xf32, #tpu.memory_space<vmem>>, vector<1x32xf32>,
    %c4_i32_80 = arith.constant 4 : i32
    %150 = arith.index_cast %1 : i32 to index
    %151 = arith.index_cast %c4_i32_80 : i32 to index
    %152 = memref.load %arg2[%150, %151] : memref<4x8xi32, #tpu.memory_space<smem>>
    %c0_i32_81 = arith.constant 0 : i32
    %c0_i32_82 = arith.constant 0 : i32
    %153 = tpu.memref_slice %arg9[%c0_i32_47, %c0_i32_81, %c0_i32_82] : memref<1x16x32xf32, #tpu.memory_space<vmem>> -> memref<1x16x32xf32, #tpu.memory_space<vmem>>
    %154 = tpu.memref_squeeze %153 : memref<1x16x32xf32, #tpu.memory_space<vmem>> -> memref<16x32xf32, #tpu.memory_space<vmem>>
    %155 = arith.index_cast %152 : i32 to index
    %c0_83 = arith.constant 0 : index
    %156 = vector.load %154[%155, %c0_83] : memref<16x32xf32, #tpu.memory_space<vmem>>, vector<1x32xf32>
    %157 = arith.index_cast %c4_i32_80 : i32 to index
    %c0_84 = arith.constant 0 : index
    %158 = vector.load %arg11[%157, %c0_84] : memref<8x32xf32, #tpu.memory_space<vmem>>, vector<1x32xf32>
    %159 = arith.addf %156, %158 : vector<1x32xf32>
    %c0_i32_85 = arith.constant 0 : i32
    %c0_i32_86 = arith.constant 0 : i32
    %160 = tpu.memref_slice %arg9[%c0_i32_47, %c0_i32_85, %c0_i32_86] : memref<1x16x32xf32, #tpu.memory_space<vmem>> -> memref<1x16x32xf32, #tpu.memory_space<vmem>>
    %161 = tpu.memref_squeeze %160 : memref<1x16x32xf32, #tpu.memory_space<vmem>> -> memref<16x32xf32, #tpu.memory_space<vmem>>
    %162 = arith.index_cast %152 : i32 to index
    %c0_87 = arith.constant 0 : index
    %163 = vector.load %161[%162, %c0_87] : memref<16x32xf32, #tpu.memory_space<vmem>>, vector<1x32xf32>
    tpu.vector_store %161[%162, %c0_87], %159 {strides = array<i32>} : memref<16x32xf32, #tpu.memory_space<vmem>>, vector<1x32xf32>,
    %c5_i32_88 = arith.constant 5 : i32
    %164 = arith.index_cast %1 : i32 to index
    %165 = arith.index_cast %c5_i32_88 : i32 to index
    %166 = memref.load %arg2[%164, %165] : memref<4x8xi32, #tpu.memory_space<smem>>
    %c0_i32_89 = arith.constant 0 : i32
    %c0_i32_90 = arith.constant 0 : i32
    %167 = tpu.memref_slice %arg9[%c0_i32_47, %c0_i32_89, %c0_i32_90] : memref<1x16x32xf32, #tpu.memory_space<vmem>> -> memref<1x16x32xf32, #tpu.memory_space<vmem>>
    %168 = tpu.memref_squeeze %167 : memref<1x16x32xf32, #tpu.memory_space<vmem>> -> memref<16x32xf32, #tpu.memory_space<vmem>>
    %169 = arith.index_cast %166 : i32 to index
    %c0_91 = arith.constant 0 : index
    %170 = vector.load %168[%169, %c0_91] : memref<16x32xf32, #tpu.memory_space<vmem>>, vector<1x32xf32>
    %171 = arith.index_cast %c5_i32_88 : i32 to index
    %c0_92 = arith.constant 0 : index
    %172 = vector.load %arg11[%171, %c0_92] : memref<8x32xf32, #tpu.memory_space<vmem>>, vector<1x32xf32>
    %173 = arith.addf %170, %172 : vector<1x32xf32>
    %c0_i32_93 = arith.constant 0 : i32
    %c0_i32_94 = arith.constant 0 : i32
    %174 = tpu.memref_slice %arg9[%c0_i32_47, %c0_i32_93, %c0_i32_94] : memref<1x16x32xf32, #tpu.memory_space<vmem>> -> memref<1x16x32xf32, #tpu.memory_space<vmem>>
    %175 = tpu.memref_squeeze %174 : memref<1x16x32xf32, #tpu.memory_space<vmem>> -> memref<16x32xf32, #tpu.memory_space<vmem>>
    %176 = arith.index_cast %166 : i32 to index
    %c0_95 = arith.constant 0 : index
    %177 = vector.load %175[%176, %c0_95] : memref<16x32xf32, #tpu.memory_space<vmem>>, vector<1x32xf32>
    tpu.vector_store %175[%176, %c0_95], %173 {strides = array<i32>} : memref<16x32xf32, #tpu.memory_space<vmem>>, vector<1x32xf32>,
    %c6_i32_96 = arith.constant 6 : i32
    %178 = arith.index_cast %1 : i32 to index
    %179 = arith.index_cast %c6_i32_96 : i32 to index
    %180 = memref.load %arg2[%178, %179] : memref<4x8xi32, #tpu.memory_space<smem>>
    %c0_i32_97 = arith.constant 0 : i32
    %c0_i32_98 = arith.constant 0 : i32
    %181 = tpu.memref_slice %arg9[%c0_i32_47, %c0_i32_97, %c0_i32_98] : memref<1x16x32xf32, #tpu.memory_space<vmem>> -> memref<1x16x32xf32, #tpu.memory_space<vmem>>
    %182 = tpu.memref_squeeze %181 : memref<1x16x32xf32, #tpu.memory_space<vmem>> -> memref<16x32xf32, #tpu.memory_space<vmem>>
    %183 = arith.index_cast %180 : i32 to index
    %c0_99 = arith.constant 0 : index
    %184 = vector.load %182[%183, %c0_99] : memref<16x32xf32, #tpu.memory_space<vmem>>, vector<1x32xf32>
    %185 = arith.index_cast %c6_i32_96 : i32 to index
    %c0_100 = arith.constant 0 : index
    %186 = vector.load %arg11[%185, %c0_100] : memref<8x32xf32, #tpu.memory_space<vmem>>, vector<1x32xf32>
    %187 = arith.addf %184, %186 : vector<1x32xf32>
    %c0_i32_101 = arith.constant 0 : i32
    %c0_i32_102 = arith.constant 0 : i32
    %188 = tpu.memref_slice %arg9[%c0_i32_47, %c0_i32_101, %c0_i32_102] : memref<1x16x32xf32, #tpu.memory_space<vmem>> -> memref<1x16x32xf32, #tpu.memory_space<vmem>>
    %189 = tpu.memref_squeeze %188 : memref<1x16x32xf32, #tpu.memory_space<vmem>> -> memref<16x32xf32, #tpu.memory_space<vmem>>
    %190 = arith.index_cast %180 : i32 to index
    %c0_103 = arith.constant 0 : index
    %191 = vector.load %189[%190, %c0_103] : memref<16x32xf32, #tpu.memory_space<vmem>>, vector<1x32xf32>
    tpu.vector_store %189[%190, %c0_103], %187 {strides = array<i32>} : memref<16x32xf32, #tpu.memory_space<vmem>>, vector<1x32xf32>,
    %c7_i32_104 = arith.constant 7 : i32
    %192 = arith.index_cast %1 : i32 to index
    %193 = arith.index_cast %c7_i32_104 : i32 to index
    %194 = memref.load %arg2[%192, %193] : memref<4x8xi32, #tpu.memory_space<smem>>
    %c0_i32_105 = arith.constant 0 : i32
    %c0_i32_106 = arith.constant 0 : i32
    %195 = tpu.memref_slice %arg9[%c0_i32_47, %c0_i32_105, %c0_i32_106] : memref<1x16x32xf32, #tpu.memory_space<vmem>> -> memref<1x16x32xf32, #tpu.memory_space<vmem>>
    %196 = tpu.memref_squeeze %195 : memref<1x16x32xf32, #tpu.memory_space<vmem>> -> memref<16x32xf32, #tpu.memory_space<vmem>>
    %197 = arith.index_cast %194 : i32 to index
    %c0_107 = arith.constant 0 : index
    %198 = vector.load %196[%197, %c0_107] : memref<16x32xf32, #tpu.memory_space<vmem>>, vector<1x32xf32>
    %199 = arith.index_cast %c7_i32_104 : i32 to index
    %c0_108 = arith.constant 0 : index
    %200 = vector.load %arg11[%199, %c0_108] : memref<8x32xf32, #tpu.memory_space<vmem>>, vector<1x32xf32>
    %201 = arith.addf %198, %200 : vector<1x32xf32>
    %c0_i32_109 = arith.constant 0 : i32
    %c0_i32_110 = arith.constant 0 : i32
    %202 = tpu.memref_slice %arg9[%c0_i32_47, %c0_i32_109, %c0_i32_110] : memref<1x16x32xf32, #tpu.memory_space<vmem>> -> memref<1x16x32xf32, #tpu.memory_space<vmem>>
    %203 = tpu.memref_squeeze %202 : memref<1x16x32xf32, #tpu.memory_space<vmem>> -> memref<16x32xf32, #tpu.memory_space<vmem>>
    %204 = arith.index_cast %194 : i32 to index
    %c0_111 = arith.constant 0 : index
    %205 = vector.load %203[%204, %c0_111] : memref<16x32xf32, #tpu.memory_space<vmem>>, vector<1x32xf32>
    tpu.vector_store %203[%204, %c0_111], %201 {strides = array<i32>} : memref<16x32xf32, #tpu.memory_space<vmem>>, vector<1x32xf32>,
    %c8_i32_112 = arith.constant 8 : i32
    return
  }
  func.func @transform_0(%arg0: i32, %arg1: i32, %arg2: memref<4x8xi32, #tpu.memory_space<smem>>) -> (i32, i32, i32, i32) {
    %c0_i32 = arith.constant 0 : i32
    %c0_i32_0 = arith.constant 0 : i32
    %c0_i32_1 = arith.constant 0 : i32
    return %arg0, %arg1, %c0_i32, %c0_i32_0 : i32, i32, i32, i32
  }
  func.func @transform_1(%arg0: i32, %arg1: i32, %arg2: memref<4x8xi32, #tpu.memory_space<smem>>) -> (i32, i32) {
    %c0_i32 = arith.constant 0 : i32
    %c0_i32_0 = arith.constant 0 : i32
    %c0_i32_1 = arith.constant 0 : i32
    return %c0_i32, %c0_i32_0 : i32, i32
  }
  func.func @transform_2(%arg0: i32, %arg1: i32, %arg2: memref<4x8xi32, #tpu.memory_space<smem>>) -> (i32, i32, i32, i32) {
    %c0_i32 = arith.constant 0 : i32
    %c0_i32_0 = arith.constant 0 : i32
    %c0_i32_1 = arith.constant 0 : i32
    return %arg0, %arg1, %c0_i32, %c0_i32_0 : i32, i32, i32, i32
  }
  func.func @transform_3(%arg0: i32, %arg1: i32, %arg2: memref<4x8xi32, #tpu.memory_space<smem>>) -> (i32, i32, i32, i32) {
    %c0_i32 = arith.constant 0 : i32
    %c0_i32_0 = arith.constant 0 : i32
    %c0_i32_1 = arith.constant 0 : i32
    return %arg0, %arg1, %c0_i32, %c0_i32_0 : i32, i32, i32, i32
  }
  func.func @transform_4(%arg0: i32, %arg1: i32, %arg2: memref<4x8xi32, #tpu.memory_space<smem>>) -> (i32, i32, i32, i32) {
    %c0_i32 = arith.constant 0 : i32
    %c0_i32_0 = arith.constant 0 : i32
    %c0_i32_1 = arith.constant 0 : i32
    return %arg0, %arg1, %c0_i32, %c0_i32_0 : i32, i32, i32, i32
  }
  func.func @transform_5(%arg0: i32, %arg1: i32, %arg2: memref<4x8xi32, #tpu.memory_space<smem>>) -> (i32, i32, i32, i32) {
    %c0_i32 = arith.constant 0 : i32
    %c0_i32_0 = arith.constant 0 : i32
    %c0_i32_1 = arith.constant 0 : i32
    return %arg0, %arg1, %c0_i32, %c0_i32_0 : i32, i32, i32, i32
  }
  func.func @transform_6(%arg0: i32, %arg1: i32, %arg2: memref<4x8xi32, #tpu.memory_space<smem>>) -> (i32, i32, i32) {
    %c0_i32 = arith.constant 0 : i32
    %c0_i32_0 = arith.constant 0 : i32
    %c0_i32_1 = arith.constant 0 : i32
    return %arg0, %c0_i32, %c0_i32_0 : i32, i32, i32
  }
}

module attributes {stable_mosaic.version = 11 : i64} {
  func.func @_epilogue_kernel(%arg0: i32, %arg1: memref<2x8x32xf32, #tpu.memory_space<vmem>>, %arg2: memref<8x32xf32, #tpu.memory_space<vmem>>, %arg3: memref<32x2xf32, #tpu.memory_space<vmem>>, %arg4: memref<8x32xf32, #tpu.memory_space<vmem>>, %arg5: memref<8x32xf32, #tpu.memory_space<vmem>>, %arg6: memref<8x32xf32, #tpu.memory_space<vmem>>) attributes {dimension_semantics = [#tpu.dimension_semantics<parallel>], iteration_bounds = array<i64: 2>, scalar_prefetch = 0 : i64, scratch_operands = 0 : i64, tpu.core_type = #tpu.core_type<tc>, window_params = [{transform_indices = @transform_0, window_bounds = array<i64: 2, 8, 32>}, {transform_indices = @transform_1, window_bounds = array<i64: 8, 32>}, {pipeline_mode = #tpu.pipeline_mode<synchronous>, transform_indices = @transform_2, window_bounds = array<i64: 32, 2>}, {transform_indices = @transform_3, window_bounds = array<i64: 8, 32>}, {transform_indices = @transform_4, window_bounds = array<i64: 8, 32>}, {transform_indices = @transform_5, window_bounds = array<i64: 8, 32>}]} {
    %c0 = arith.constant 0 : index
    %c0_0 = arith.constant 0 : index
    %c0_1 = arith.constant 0 : index
    %0 = vector.load %arg1[%c0, %c0_0, %c0_1] : memref<2x8x32xf32, #tpu.memory_space<vmem>>, vector<2x8x32xf32>
    %cst = arith.constant dense<0.000000e+00> : vector<8x32xf32>
    %1 = vector.multi_reduction <add>, %0, %cst [0] : vector<2x8x32xf32> to vector<8x32xf32>
    %c0_2 = arith.constant 0 : index
    %c0_3 = arith.constant 0 : index
    %2 = vector.load %arg2[%c0_2, %c0_3] : memref<8x32xf32, #tpu.memory_space<vmem>>, vector<8x32xf32>
    %c0_4 = arith.constant 0 : index
    %c0_5 = arith.constant 0 : index
    %3 = vector.load %arg3[%c0_4, %c0_5] : memref<32x2xf32, #tpu.memory_space<vmem>>, vector<32x2xf32>
    %cst_6 = arith.constant dense<0.000000e+00> : vector<8x2xf32>
    %4 = tpu.matmul %2, %3, %cst_6 {dimension_numbers = #tpu.dot_dimension_numbers<[1], [0], [0], [1], [0, 0, 1, 1], [], []>} : vector<8x32xf32>, vector<32x2xf32>, vector<8x2xf32> -> vector<8x2xf32>
    %cst_7 = arith.constant dense<0xFF800000> : vector<8xf32>
    %5 = vector.multi_reduction <maximumf>, %4, %cst_7 [1] : vector<8x2xf32> to vector<8xf32>
    %6 = vector.shape_cast %5 : vector<8xf32> to vector<8x1xf32>
    %7 = vector.broadcast %6 : vector<8x1xf32> to vector<8x2xf32>
    %8 = arith.subf %4, %7 : vector<8x2xf32>
    %9 = math.exp %8 : vector<8x2xf32>
    %cst_8 = arith.constant dense<0.000000e+00> : vector<8xf32>
    %10 = vector.multi_reduction <add>, %9, %cst_8 [1] : vector<8x2xf32> to vector<8xf32>
    %11 = vector.shape_cast %10 : vector<8xf32> to vector<8x1xf32>
    %12 = tpu.reciprocal %11 {approx = true} : vector<8x1xf32> -> vector<8x1xf32>
    %13 = vector.broadcast %12 : vector<8x1xf32> to vector<8x2xf32>
    %14 = arith.mulf %9, %13 : vector<8x2xf32>
    %c0_9 = arith.constant 0 : index
    %c0_10 = arith.constant 0 : index
    %15 = vector.load %arg4[%c0_9, %c0_10] : memref<8x32xf32, #tpu.memory_space<vmem>>, vector<8x32xf32>
    %16 = vector.extract_strided_slice %14 {offsets = [0, 0], sizes = [8, 1], strides = [1, 1]} : vector<8x2xf32> to vector<8x1xf32>
    %17 = vector.broadcast %16 : vector<8x1xf32> to vector<8x32xf32>
    %18 = arith.mulf %15, %17 : vector<8x32xf32>
    %19 = vector.extract_strided_slice %14 {offsets = [0, 1], sizes = [8, 1], strides = [1, 1]} : vector<8x2xf32> to vector<8x1xf32>
    %20 = vector.broadcast %19 : vector<8x1xf32> to vector<8x32xf32>
    %21 = arith.mulf %1, %20 : vector<8x32xf32>
    %22 = arith.addf %18, %21 : vector<8x32xf32>
    %c0_11 = arith.constant 0 : index
    %c0_12 = arith.constant 0 : index
    %23 = vector.load %arg5[%c0_11, %c0_12] : memref<8x32xf32, #tpu.memory_space<vmem>>, vector<8x32xf32>
    %24 = arith.addf %22, %23 : vector<8x32xf32>
    %c0_13 = arith.constant 0 : index
    %c0_14 = arith.constant 0 : index
    %25 = vector.load %arg6[%c0_13, %c0_14] : memref<8x32xf32, #tpu.memory_space<vmem>>, vector<8x32xf32>
    tpu.vector_store %arg6[%c0_13, %c0_14], %24 {strides = array<i32>} : memref<8x32xf32, #tpu.memory_space<vmem>>, vector<8x32xf32>,
    return
  }
  func.func @transform_0(%arg0: i32) -> (i32, i32, i32) {
    %c0_i32 = arith.constant 0 : i32
    %c0_i32_0 = arith.constant 0 : i32
    %c0_i32_1 = arith.constant 0 : i32
    return %c0_i32, %arg0, %c0_i32_0 : i32, i32, i32
  }
  func.func @transform_1(%arg0: i32) -> (i32, i32) {
    %c0_i32 = arith.constant 0 : i32
    %c0_i32_0 = arith.constant 0 : i32
    return %arg0, %c0_i32 : i32, i32
  }
  func.func @transform_2(%arg0: i32) -> (i32, i32) {
    %c0_i32 = arith.constant 0 : i32
    %c0_i32_0 = arith.constant 0 : i32
    %c0_i32_1 = arith.constant 0 : i32
    return %c0_i32, %c0_i32_0 : i32, i32
  }
  func.func @transform_3(%arg0: i32) -> (i32, i32) {
    %c0_i32 = arith.constant 0 : i32
    %c0_i32_0 = arith.constant 0 : i32
    return %arg0, %c0_i32 : i32, i32
  }
  func.func @transform_4(%arg0: i32) -> (i32, i32) {
    %c0_i32 = arith.constant 0 : i32
    %c0_i32_0 = arith.constant 0 : i32
    return %arg0, %c0_i32 : i32, i32
  }
  func.func @transform_5(%arg0: i32) -> (i32, i32) {
    %c0_i32 = arith.constant 0 : i32
    %c0_i32_0 = arith.constant 0 : i32
    return %arg0, %c0_i32 : i32, i32
  }
}

</mosaic_0001>

<bundles_post_ra>
// kernel: div.5
= control target key start
LH: loop header
LB: loop body
LE: loop exit
PB: predicated region body
PF: predicated region fallthrough
CT: control target
= control target key end

     0   :  { %vm7_vm0 = vcmask 64512   ;;  %vm13_vm1 = vcmask 130112   ;;  %s39_s0 = inlined_call_operand.vmem [shape: f32[2,8], index: 0, kind: input, shape index: {}]   ;;  %s40_s1 = inlined_call_operand.vmem [shape: f32[16], index: 1, kind: output, shape index: {}]  }
   0x1   :  { %v4_v0 = vld [vmem:[%s39_s0] sm:$0x3]  ;;  %s22_s0 = smov 8  }
   0x2   :  { %5 = vst [vmem:[#allocation1] sm:$0x3] %v4_v0 }
   0x9   :  { %v10_v1 = vld [vmem:[#allocation1 + $0x1] sm:$0x1]   ;;  %v6_v2 = vld [vmem:[#allocation1] sm:$0x1]  }
   0xa   :  { %11 = vrot.lane.b32.xlu0 %v10_v1, %s22_s0  ;;  %8 = vst.msk [vmem:[#allocation0] sm:$0x1] %vm7_vm0, %v6_v2  }
  0x7c   :  { %v12_v3 = vpop.permute.xlu0 %11  }
  0x7d   :  { %14 = vst.msk [vmem:[#allocation0] sm:$0x1] %vm13_vm1, %v12_v3  }
  0x84   :  { %v18_v4 = vld [vmem:[#allocation0] sm:$0x1] }
  0x85   :  { %20 = vst [vmem:[%s40_s1] sm:$0x1] %v18_v4 }

// kernel: _lambda_.3
= control target key start
LH: loop header
LB: loop body
LE: loop exit
PB: predicated region body
PF: predicated region fallthrough
CT: control target
= control target key end

     0   :  { %s2483_s24 = smov 0   ;;  %s2714_s0 = inlined_call_operand.vmem [shape: f32[2,8,32], index: 0, kind: input, shape index: {}]   ;;  %s2715_s1 = inlined_call_operand.vmem [shape: f32[1,32], index: 1, kind: input, shape index: {}]   ;;  %s2716_s2 = inlined_call_operand.vmem [shape: f32[1,32], index: 2, kind: input, shape index: {}]   ;;  %s2717_s3 = inlined_call_operand.vmem [shape: f32[32,96], index: 3, kind: input, shape index: {}]   ;;  %s2718_s4 = inlined_call_operand.vmem [shape: f32[1,96], index: 4, kind: input, shape index: {}]   ;;  %s2719_s5 = inlined_call_operand.vmem [shape: f32[32,32], index: 5, kind: input, shape index: {}]   ;;  %s2720_s6 = inlined_call_operand.vmem [shape: f32[1,32], index: 6, kind: input, shape index: {}]   ;;  %s2721_s7 = inlined_call_operand.vmem [shape: f32[1,32], index: 7, kind: input, shape index: {}]   ;;  %s2722_s8 = inlined_call_operand.vmem [shape: f32[1,32], index: 8, kind: input, shape index: {}]   ;;  %s2723_s9 = inlined_call_operand.vmem [shape: f32[32,4], index: 9, kind: input, shape index: {}]   ;;  %s2724_s10 = inlined_call_operand.vmem [shape: f32[32,64], index: 10, kind: input, shape index: {}]   ;;  %s2725_s11 = inlined_call_operand.vmem [shape: f32[1,64], index: 11, kind: input, shape index: {}]   ;;  %s2726_s12 = inlined_call_operand.vmem [shape: f32[64,32], index: 12, kind: input, shape index: {}]   ;;  %s2727_s13 = inlined_call_operand.vmem [shape: f32[1,32], index: 13, kind: input, shape index: {}]   ;;  %s2728_s14 = inlined_call_operand.vmem [shape: f32[2,8,32], index: 14, kind: output, shape index: {0}]   ;;  %s2729_s15 = inlined_call_operand.vmem [shape: f32[2,8,32], index: 15, kind: output, shape index: {1}]   ;;  %s2730_s16 = inlined_call_operand.vmem [shape: f32[2,8,4], index: 16, kind: output, shape index: {2}]   ;;  %s2731_s17 = inlined_call_operand.vmem [shape: f32[2,8,32], index: 17, kind: output, shape index: {3}]  }
   0x1   :  { %2732 = sst [smem:[#allocation2_spill]] %s2714_s0 }
   0x2   :  { %2733 = sst [smem:[#allocation3_spill]] %s2715_s1 }
   0x3 LB: > { %s2097_s25 = sadd.s32 4294967295, %s2377_s24   ;;  %p2101_p0 = scmp.ge.s32.totalorder %s2377_s24, 1  ;;  %s2377_s24 = sphi %s2483_s24, %s28_s24  }
   0x4   : > { %p493_p1 = scmp.lt.s32.totalorder %s2377_s24, 3 }
   0x6   : > { %p494_p2 = pnand %p2101_p0, %p493_p1 }
   0x7   : > { %p555_p3 = scmp.lt.s32.totalorder (!%p494_p2), %s2097_s25, 1  ;;  %vm578_vm0 = vcmask (!%p494_p2), 261120   ;;  %s2734_s29 = sld [smem:[#allocation2_spill]] (!%p494_p2)  ;;  %v607_v7 = vld [vmem:[%s2717_s3] sm:$0xff] (!%p494_p2)  ;;  %v608_v8 = vld [vmem:[%s2717_s3 + $0x8] sm:$0xff] (!%p494_p2)  ;;  %v609_v9 = vld [vmem:[%s2717_s3 + $0x10] sm:$0xff] (!%p494_p2) }
   0x8   : > { %497 = sbr.rel (%p494_p2) target bundleno = 3667 (0xe53), region = 76  ;;  %v2379_v10 = vmov (!%p494_p2), 0.0|0.0   ;;  %v2298_v11 = vpack.c.bf16 (!%p494_p2), %v608_v8, %v607_v7  ;;  %v610_v12 = vld [vmem:[%s2717_s3 + $0x18] sm:$0xff] (!%p494_p2)  ;;  %vm2380_vm1 = vmmov (!%p494_p2), 0   ;;  %v2381_v13 = vmov (!%p494_p2), 0.0   ;;  %s2735_s28 = sld [smem:[#allocation3_spill]] (!%p494_p2) }
   0x9   : > { %2297 = vmatprep.subr.bf16.mxu1 (!%p494_p2), %v2379_v10  ;;  %2193 = vmatprep.mubr.msk.f32.mxu1 (!%p494_p2), %vm2380_vm1, %v2381_v13  ;;  %v2301_v14 = vpack.c.bf16 (!%p494_p2), %v610_v12, %v609_v9  ;;  %v2108_v21 = vld [vmem:[%s2716_s2] ss:$0 sm:$0xff] (!%p494_p2)  ;;  %s2382_s19 = smov (!%p494_p2), 120   ;;  %s2383_s1 = smov (!%p494_p2), 96   ;;  %vm698_vm2 = vcmask (!%p494_p2), 64512   ;;  %v692_v49 = vld [vmem:[%s2719_s5 + $0x8] sm:$0xff] (!%p494_p2) }
   0xa   : > { %2206 = vmatprep.subr.mxu0 (!%p494_p2), %v2381_v13  ;;  %2208 = vmatprep.mubr.msk.f32.mxu0 (!%p494_p2), %vm2380_vm1, %v2381_v13  ;;  %v2109_v24 = vld [vmem:[%s2718_s4] ss:$0 sm:$0xff] (!%p494_p2)  ;;  %s2384_s20 = smov (!%p494_p2), 88   ;;  %s2385_s21 = smov (!%p494_p2), 56   ;;  %vm1769_vm3 = vcmask (!%p494_p2), 31744   ;;  %vm1876_vm4 = vcmask (!%p494_p2), 523264  }
   0xb   : > { %2299 = vmatpush3.bf16.msra.mxu1 (!%p494_p2), %v2298_v11  ;;  %s2386_s22 = smov (!%p494_p2), 64   ;;  %s2387_s23 = smov (!%p494_p2), 80   ;;  %v691_v58 = vld [vmem:[%s2719_s5] sm:$0xff] (!%p494_p2) }
   0xc   : > { %2300 = vmatprep.subr.bf16.mxu1 (!%p494_p2), %v2379_v10  ;;  %s2389_s30 = smov (!%p494_p2), 48   ;;  %s2390_s18 = smov (!%p494_p2), 104  }
   0xe   : > { %v2107_v19 = vld [vmem:[%s2735_s28] ss:$0 sm:$0xff] (!%p494_p2) }
   0xf   : > { %s2737_s25 = smov (!%p555_p3, %s2097_s25), 1  ;;  %2302 = vmatpush3.bf16.msra.mxu1 %v2301_v14 }
  0x10   : > { %s2491_s26 = sshll.u32 %s2737_s25, 3  ;;  %2196 = vmatprep.subr.mxu1 %v2381_v13  ;;  %s2388_s25 = smov 112  }
  0x11   : > { %s558_s0 = scalar_lea.vmem %s2734_s29, %s2491_s26  ;;  %s566_s27 = scalar_lea.vmem %s2729_s15, %s2491_s26 }
  0x12   : > { %v575_v0 = vld [vmem:[%s558_s0] sm:$0xff]  ;;  %s562_s0 = scalar_lea.vmem %s2728_s14, %s2491_s26 }
  0x13   : > { %v579_v1 = vsel %vm578_vm0, %v575_v0, 0.0 }
  0x14   : > { %580 = vadd.xlane.f32.xlu0 %v579_v1 }
  0xa1   : > { %v581_v2 = vpop.xlane.xlu0 %580 }
  0xa2   : > { %v583_v3 = vmul.f32 0.03125, %v581_v2 }
  0xa4   : > { %v584_v4 = vsub.f32 %v575_v0, %v583_v3 }
  0xa6   : > { %v585_v5 = vmul.f32 %v584_v4, %v584_v4 }
  0xa8   : > { %v586_v6 = vsel %vm578_vm0, %v585_v5, 0.0 }
  0xa9   : > { %587 = vadd.xlane.f32.xlu0 %v586_v6 }
 0x136   : > { %v588_v15 = vpop.xlane.xlu0 %587 }
 0x137   : > { %v589_v16 = vmul.f32 0.03125, %v588_v15 }
 0x139   : > { %v590_v17 = vadd.f32 1e-05, %v589_v16 }
 0x13b   : > { %2349 = vrsqrt.f32 %v590_v17 }
 0x145   : > { %v2350_v18 = vpop.eup %2349 }
 0x146   : > { %v592_v20 = vmul.f32 %v2350_v18, %v584_v4 }
 0x148   : > { %v599_v22 = vmul.f32 %v2107_v19, %v592_v20 }
 0x14a   : > { %v606_v23 = vadd.f32 %v2108_v21, %v599_v22 }
 0x14c   : > { %2194 = vmatmul.mubr.msk.f32.vlgmr.msra.gmra.mrb[0].mxu1 %vm578_vm0, %v606_v23  ;;  %v693_v23 = vld [vmem:[%s2719_s5 + $0x10] sm:$0xff] }
 0x14d   : > { %2198 = vmatprep.mubr.msk.f32.mxu1 %vm2380_vm1, %v2381_v13 }
 0x21f   : > { %v687_v25 = vpop.f32.mrb[0].mxu1 }
 0x220   : > { %v2531_v26 = vadd.f32 %v2109_v24, %v687_v25  ;;  %v2195_v27 = vpop.f32.mrb[1].mxu1 }
 0x222   : > { %861 = vrot.lane.b32.xlu0 %v2531_v26, %s2382_s19  ;;  %696 = vrot.lane.b32.xlu1 %v2531_v26, %s2383_s1  ;;  %s2391_s19 = smov 72  }
 0x226   : > { %863 = vrot.lane.b32.xlu1 %v2531_v26, %s2384_s20 }
 0x294   : > { %v697_v28 = vpop.permute.xlu1 %696  ;;  %v862_v30 = vpop.permute.xlu0 %861 }
 0x295   : > { %2197 = vmatpush3.xpose.msk.msra.mxu1 %vm698_vm2, %v697_v28 }
 0x296   : > { %2201 = vmatprep.subr.mxu1 %v2381_v13 }
 0x298   : > { %2199 = vmatmul.mubr.msk.f32.vlgmr.msra.gmra.mrb[2].mxu1 %vm698_vm2, %v2531_v26  ;;  %v864_v29 = vpop.permute.xlu1 %863 }
 0x299   : > { %2207 = vmatpush3.xpose.msk.msra.mxu0 %vm698_vm2, %v864_v29  ;;  %2203 = vmatprep.mubr.msk.f32.mxu1 %vm2380_vm1, %v2381_v13 }
 0x29a   : > { %2216 = vmatprep.subr.mxu0 %v2381_v13 }
 0x29c   : > { %2209 = vmatmul.mubr.msk.f32.vlgmr.msra.gmra.mrb[0].mxu0 %vm698_vm2, %v862_v30 }
 0x29d   : > { %2218 = vmatprep.mubr.msk.f32.mxu0 %vm2380_vm1, %v2381_v13  ;;  %2217 = vmatpush3.msra.mxu0 %v692_v49 }
 0x29e   : > { %2226 = vmatprep.subr.mxu0 %v2381_v13 }
 0x36b   : > { %v769_v31 = vpop.f32.mrb[2].mxu1 }
 0x36c   : > { %v773_v32 = vmul.f32 0.35355338, %v769_v31  ;;  %v2200_v33 = vpop.f32.mrb[3].mxu1 }
 0x36e   : > { %v774_v34 = vsel %vm698_vm2, %v773_v32, -inf }
 0x36f   : > { %v935_v35 = vpop.f32.mrb[0].mxu0  ;;  %775 = vmax.xlane.f32.xlu1 %v774_v34 }
 0x370   : > { %v939_v36 = vmul.f32 0.35355338, %v935_v35  ;;  %v2210_v37 = vpop.f32.mrb[1].mxu0 }
 0x372   : > { %v940_v38 = vsel %vm698_vm2, %v939_v36, -inf }
 0x373   : > { %941 = vmax.xlane.f32.xlu0 %v940_v38 }
 0x389   : > { %951 = vrot.lane.b32.xlu0 %v2531_v26, %s2385_s21  ;;  %s2392_s21 = smov 40  }
 0x3fc   : > { %v776_v39 = vpop.xlane.xlu1 %775 }
 0x3fd   : > { %v777_v40 = vsub.f32 %v773_v32, %v776_v39 }
 0x3ff   : > { %v778_v41 = vmul.f32 1.442695, %v777_v40 }
 0x400   : > { %v942_v42 = vpop.xlane.xlu0 %941 }
 0x401   : > { %2351 = vpow2.f32 %v778_v41  ;;  %v943_v43 = vsub.f32 %v939_v36, %v942_v42  ;;  %v694_v36 = vld [vmem:[%s2719_s5 + $0x18] sm:$0xff] }
 0x403   : > { %v944_v44 = vmul.f32 1.442695, %v943_v43 }
 0x404   : > { %v952_v55 = vpop.permute.xlu0 %951 }
 0x405   : > { %2353 = vpow2.f32 %v944_v44 }
 0x40b   : > { %v2352_v45 = vpop.eup %2351 }
 0x40c   : > { %v780_v46 = vsel %vm698_vm2, %v2352_v45, 0.0 }
 0x40d   : > { %781 = vadd.xlane.f32.xlu1 %v780_v46  ;;  %v2127_v46 = vld [vmem:[%s2720_s6] ss:$0 sm:$0xff] }
 0x40f   : > { %v2354_v47 = vpop.eup %2353 }
 0x410   : > { %v946_v48 = vsel %vm698_vm2, %v2354_v47, 0.0 }
 0x411   : > { %947 = vadd.xlane.f32.xlu1 %v946_v48 }
 0x422   : > { %785 = vrot.lane.b32.xlu1 %v2531_v26, %s2386_s22 }
 0x426   : > { %1175 = vrot.lane.b32.xlu1 %v2531_v26, %s2387_s23 }
 0x42a   : > { %1173 = vrot.lane.b32.xlu1 %v2531_v26, %s2388_s25 }
 0x49a   : > { %v782_v50 = vpop.xlane.xlu1 %781 }
 0x49b   : > { %2355 = vrcp.f32 %v782_v50 }
 0x49e   : > { %v948_v51 = vpop.xlane.xlu1 %947 }
 0x49f   : > { %2357 = vrcp.f32 %v948_v51 }
 0x4a2   : > { %v786_v52 = vpop.permute.xlu1 %785 }
 0x4a3   : > { %2202 = vmatpush3.msra.mxu1 %v786_v52 }
 0x4a4   : > { %2211 = vmatprep.subr.mxu1 %v2381_v13 }
 0x4a5   : > { %v2356_v53 = vpop.eup %2355 }
 0x4a6   : > { %v784_v54 = vmul.f32 %v2356_v53, %v2352_v45  ;;  %v1176_v61 = vpop.permute.xlu1 %1175 }
 0x4a8   : > { %2204 = vmatmul.mubr.msk.f32.vlgmr.msra.gmra.mrb[4].mxu1 %vm698_vm2, %v784_v54 }
 0x4a9   : > { %v2358_v56 = vpop.eup %2357  ;;  %2212 = vmatpush3.msra.mxu1 %v952_v55  ;;  %2213 = vmatprep.mubr.msk.f32.mxu1 %vm2380_vm1, %v2381_v13 }
 0x4aa   : > { %v950_v57 = vmul.f32 %v2358_v56, %v2354_v47  ;;  %2221 = vmatprep.subr.mxu1 %v2381_v13  ;;  %v1174_v0 = vpop.permute.xlu1 %1173  ;;  %v1692_v56 = vld [vmem:[%s2723_s9] sm:$0xff] }
 0x4ac   : > { %2214 = vmatmul.mubr.msk.f32.vlgmr.msra.gmra.mrb[6].mxu1 %vm698_vm2, %v950_v57  ;;  %v1693_v57 = vld [vmem:[%s2723_s9 + $0x8] sm:$0xff] }
 0x4ad   : > { %2223 = vmatprep.mubr.msk.f32.mxu1 %vm2380_vm1, %v2381_v13  ;;  %2222 = vmatpush3.msra.mxu1 %v691_v58  ;;  %v1771_v58 = vld [vmem:[%s2724_s10] sm:$0xff] }
 0x4ae   : > { %2231 = vmatprep.subr.mxu1 %v2381_v13 }
 0x57b   : > { %v857_v59 = vpop.f32.mrb[4].mxu1 }
 0x57c   : > { %v2205_v60 = vpop.f32.mrb[5].mxu1  ;;  %2224 = vmatmul.mubr.msk.f32.vlgmr.msra.gmra.mrb[8].mxu1 %vm698_vm2, %v857_v59  ;;  %v2304_v59 = vpack.c.bf16 %v1693_v57, %v1692_v56 }
 0x57d   : > { %2233 = vmatprep.mubr.msk.f32.mxu1 %vm2380_vm1, %v2381_v13  ;;  %v1772_v60 = vld [vmem:[%s2724_s10 + $0x8] sm:$0xff] }
 0x57f   : > { %v1023_v62 = vpop.f32.mrb[6].mxu1 }
 0x580   : > { %v2215_v63 = vpop.f32.mrb[7].mxu1  ;;  %2219 = vmatmul.mubr.msk.f32.vlgmr.msra.gmra.mrb[2].mxu0 %vm698_vm2, %v1023_v62  ;;  %v1694_v62 = vld [vmem:[%s2723_s9 + $0x10] sm:$0xff] }
 0x581   : > { %2227 = vmatpush3.xpose.msk.msra.mxu0 %vm698_vm2, %v1176_v61  ;;  %2228 = vmatprep.mubr.msk.f32.mxu0 %vm2380_vm1, %v2381_v13  ;;  %v2310_v61 = vpack.c.bf16 %v1772_v60, %v1771_v58  ;;  %v1695_v63 = vld [vmem:[%s2723_s9 + $0x18] sm:$0xff] }
 0x582   : > { %2236 = vmatprep.subr.mxu0 %v2381_v13 }
 0x584   : > { %2229 = vmatmul.mubr.msk.f32.vlgmr.msra.gmra.mrb[4].mxu0 %vm698_vm2, %v1174_v0  ;;  %v1773_v0 = vld [vmem:[%s2724_s10 + $0x10] sm:$0xff] }
 0x585   : > { %2238 = vmatprep.mubr.msk.f32.mxu0 %vm2380_vm1, %v2381_v13  ;;  %2237 = vmatpush3.msra.mxu0 %v693_v23  ;;  %v1867_v23 = vld [vmem:[%s2726_s12 + $0x30] sm:$0xff] }
 0x586   : > { %2246 = vmatprep.subr.mxu0 %v2381_v13 }
 0x64f   : > { %v1169_v1 = vpop.f32.mrb[8].mxu1 }
 0x650   : > { %v2225_v2 = vpop.f32.mrb[9].mxu1 }
 0x651   : > { %v1774_v2 = vld [vmem:[%s2724_s10 + $0x18] sm:$0xff] }
 0x653   : > { %v1096_v3 = vpop.f32.mrb[2].mxu0 }
 0x654   : > { %v1170_v4 = vadd.f32 %v1169_v1, %v1096_v3  ;;  %v2220_v5 = vpop.f32.mrb[3].mxu0  ;;  %v2307_v1 = vpack.c.bf16 %v1695_v63, %v1694_v62  ;;  %v2313_v3 = vpack.c.bf16 %v1774_v2, %v1773_v0 }
 0x657   : > { %v1247_v6 = vpop.f32.mrb[4].mxu0 }
 0x658   : > { %v1251_v7 = vmul.f32 0.35355338, %v1247_v6  ;;  %v2230_v8 = vpop.f32.mrb[5].mxu0 }
 0x659   : > { %v2128_v8 = vld [vmem:[%s2721_s7] ss:$0 sm:$0xff] }
 0x65a   : > { %v1252_v9 = vsel %vm698_vm2, %v1251_v7, -inf }
 0x65b   : > { %1253 = vmax.xlane.f32.xlu1 %v1252_v9 }
 0x66c   : > { %1263 = vrot.lane.b32.xlu1 %v2531_v26, %s2389_s30 }
 0x670   : > { %1413 = vrot.lane.b32.xlu1 %v2531_v26, %s2390_s18 }
 0x6e8   : > { %v1254_v11 = vpop.xlane.xlu1 %1253 }
 0x6e9   : > { %v1255_v12 = vsub.f32 %v1251_v7, %v1254_v11  ;;  %v2129_v11 = vld [vmem:[%s2722_s8] ss:$0 sm:$0xff] }
 0x6eb   : > { %v1256_v14 = vmul.f32 1.442695, %v1255_v12 }
 0x6ec   : > { %v1264_v15 = vpop.permute.xlu1 %1263 }
 0x6ed   : > { %2359 = vpow2.f32 %v1256_v14  ;;  %2232 = vmatpush3.msra.mxu1 %v1264_v15  ;;  %v1861_v15 = vld [vmem:[%s2726_s12] sm:$0xff] }
 0x6ee   : > { %2241 = vmatprep.subr.mxu1 %v2381_v13 }
 0x6f0   : > { %v1414_v22 = vpop.permute.xlu1 %1413 }
 0x6f7   : > { %v2360_v16 = vpop.eup %2359 }
 0x6f8   : > { %v1258_v17 = vsel %vm698_vm2, %v2360_v16, 0.0 }
 0x6f9   : > { %1259 = vadd.xlane.f32.xlu0 %v1258_v17 }
 0x70f   : > { %1415 = vrot.lane.b32.xlu0 %v2531_v26, %s2391_s19  ;;  %s570_s19 = scalar_lea.vmem %s2730_s16, %s2491_s26 }
 0x786   : > { %v1260_v18 = vpop.xlane.xlu0 %1259 }
 0x787   : > { %2361 = vrcp.f32 %v1260_v18  ;;  %v1863_v18 = vld [vmem:[%s2726_s12 + $0x10] sm:$0xff] }
 0x78a   : > { %v1416_v21 = vpop.permute.xlu0 %1415 }
 0x791   : > { %v2362_v19 = vpop.eup %2361 }
 0x792   : > { %v1262_v20 = vmul.f32 %v2362_v19, %v2360_v16  ;;  %v1862_v16 = vld [vmem:[%s2726_s12 + $0x8] sm:$0xff]  ;;  %v1864_v19 = vld [vmem:[%s2726_s12 + $0x18] sm:$0xff] }
 0x793   : > { %v2316_v17 = vpack.c.bf16 %v1862_v16, %v1861_v15 }
 0x794   : > { %2234 = vmatmul.mubr.msk.f32.vlgmr.msra.gmra.mrb[10].mxu1 %vm698_vm2, %v1262_v20  ;;  %v1865_v20 = vld [vmem:[%s2726_s12 + $0x20] sm:$0xff] }
 0x795   : > { %2242 = vmatpush3.xpose.msk.msra.mxu1 %vm698_vm2, %v1416_v21  ;;  %2243 = vmatprep.mubr.msk.f32.mxu1 %vm2380_vm1, %v2381_v13  ;;  %v1866_v21 = vld [vmem:[%s2726_s12 + $0x28] sm:$0xff] }
 0x796   : > { %2251 = vmatprep.subr.mxu1 %v2381_v13 }
 0x798   : > { %2244 = vmatmul.mubr.msk.f32.vlgmr.msra.gmra.mrb[12].mxu1 %vm698_vm2, %v1414_v22  ;;  %v2322_v22 = vpack.c.bf16 %v1866_v21, %v1865_v20 }
 0x799   : > { %2253 = vmatprep.mubr.msk.f32.mxu1 %vm2380_vm1, %v2381_v13  ;;  %2252 = vmatpush3.msra.mxu1 %v694_v36 }
 0x79a   : > { %2309 = vmatprep.subr.bf16.mxu1 %v2379_v10 }
 0x867   : > { %v1335_v24 = vpop.f32.mrb[10].mxu1 }
 0x868   : > { %v2235_v25 = vpop.f32.mrb[11].mxu1  ;;  %2239 = vmatmul.mubr.msk.f32.vlgmr.msra.gmra.mrb[6].mxu0 %vm698_vm2, %v1335_v24  ;;  %v1868_v24 = vld [vmem:[%s2726_s12 + $0x38] sm:$0xff] }
 0x869   : > { %2248 = vmatprep.mubr.msk.f32.mxu0 %vm2380_vm1, %v2381_v13  ;;  %v2325_v25 = vpack.c.bf16 %v1868_v24, %v1867_v23 }
 0x86b   : > { %v1487_v27 = vpop.f32.mrb[12].mxu1 }
 0x86c   : > { %v1491_v28 = vmul.f32 0.35355338, %v1487_v27  ;;  %v2245_v29 = vpop.f32.mrb[13].mxu1  ;;  %v2131_v27 = vld [vmem:[%s2725_s11] ss:$0 sm:$0xff] }
 0x86e   : > { %v1492_v30 = vsel %vm698_vm2, %v1491_v28, -inf }
 0x86f   : > { %1493 = vmax.xlane.f32.xlu1 %v1492_v30 }
 0x8fc   : > { %v1494_v31 = vpop.xlane.xlu1 %1493 }
 0x8fd   : > { %v1495_v32 = vsub.f32 %v1491_v28, %v1494_v31 }
 0x8ff   : > { %v1496_v33 = vmul.f32 1.442695, %v1495_v32 }
 0x901   : > { %2363 = vpow2.f32 %v1496_v33 }
 0x90b   : > { %v2364_v34 = vpop.eup %2363 }
 0x90c   : > { %v1498_v35 = vsel %vm698_vm2, %v2364_v34, 0.0 }
 0x90d   : > { %1499 = vadd.xlane.f32.xlu0 %v1498_v35 }
 0x923   : > { %1503 = vrot.lane.b32.xlu0 %v2531_v26, %s2392_s21 }
 0x93b   : > { %v1408_v37 = vpop.f32.mrb[6].mxu0 }
 0x93c   : > { %v1412_v38 = vadd.f32 %v1408_v37, %v1170_v4  ;;  %v2240_v39 = vpop.f32.mrb[7].mxu0 }
 0x99a   : > { %v1500_v40 = vpop.xlane.xlu0 %1499 }
 0x99b   : > { %2365 = vrcp.f32 %v1500_v40 }
 0x99e   : > { %v1504_v41 = vpop.permute.xlu0 %1503 }
 0x99f   : > { %2247 = vmatpush3.msra.mxu0 %v1504_v41  ;;  %v2133_v41 = vld [vmem:[%s2727_s13] ss:$0 sm:$0xff] }
 0x9a0   : > { %2303 = vmatprep.subr.bf16.mxu0 %v2379_v10 }
 0x9a5   : > { %v2366_v42 = vpop.eup %2365 }
 0x9a6   : > { %v1502_v43 = vmul.f32 %v2366_v42, %v2364_v34 }
 0x9a8   : > { %2249 = vmatmul.mubr.msk.f32.vlgmr.msra.gmra.mrb[8].mxu0 %vm698_vm2, %v1502_v43 }
 0x9a9   : > { %2264 = vmatprep.mubr.msk.f32.mxu0 %vm2380_vm1, %v2381_v13  ;;  %2305 = vmatpush3.bf16.msra.mxu0 %v2304_v59 }
 0x9aa   : > { %2306 = vmatprep.subr.bf16.mxu0 %v2379_v10 }
 0x9ad   : > { %2308 = vmatpush3.bf16.msra.mxu0 %v2307_v1 }
 0x9ae   : > { %2315 = vmatprep.subr.bf16.mxu0 %v2379_v10 }
 0xa7b   : > { %v1575_v26 = vpop.f32.mrb[8].mxu0 }
 0xa7c   : > { %v2250_v44 = vpop.f32.mrb[9].mxu0  ;;  %2254 = vmatmul.mubr.msk.f32.vlgmr.msra.gmra.mrb[14].mxu1 %vm698_vm2, %v1575_v26 }
 0xa7d   : > { %2275 = vmatprep.mubr.msk.f32.mxu1 %vm2380_vm1, %v2381_v13  ;;  %2311 = vmatpush3.bf16.msra.mxu1 %v2310_v61 }
 0xa7e   : > { %2312 = vmatprep.subr.bf16.mxu1 %v2379_v10 }
 0xa81   : > { %2314 = vmatpush3.bf16.msra.mxu1 %v2313_v3 }
 0xb4f   : > { %v1648_v45 = vpop.f32.mrb[14].mxu1 }
 0xb50   : > { %v1652_v47 = vadd.f32 %v1648_v45, %v1412_v38  ;;  %v2255_v48 = vpop.f32.mrb[15].mxu1 }
 0xb52   : > { %v1660_v49 = vadd.f32 %v2127_v46, %v1652_v47 }
 0xb54   : > { %1661 = vst.msk [vmem:[%s562_s0] sm:$0xff] %vm578_vm0, %v1660_v49  ;;  %v1664_v50 = vsel %vm578_vm0, %v1660_v49, 0.0 }
 0xb55   : > { %1665 = vadd.xlane.f32.xlu1 %v1664_v50 }
 0xbe2   : > { %v1666_v51 = vpop.xlane.xlu1 %1665 }
 0xbe3   : > { %v1667_v52 = vmul.f32 0.03125, %v1666_v51 }
 0xbe5   : > { %v1668_v53 = vsub.f32 %v1660_v49, %v1667_v52 }
 0xbe7   : > { %v1669_v54 = vmul.f32 %v1668_v53, %v1668_v53 }
 0xbe9   : > { %v1670_v55 = vsel %vm578_vm0, %v1669_v54, 0.0 }
 0xbea   : > { %1671 = vadd.xlane.f32.xlu1 %v1670_v55 }
 0xc77   : > { %v1672_v4 = vpop.xlane.xlu1 %1671 }
 0xc78   : > { %v1673_v5 = vmul.f32 0.03125, %v1672_v4 }
 0xc7a   : > { %v1674_v6 = vadd.f32 1e-05, %v1673_v5 }
 0xc7c   : > { %2367 = vrsqrt.f32 %v1674_v6 }
 0xc86   : > { %v2368_v7 = vpop.eup %2367 }
 0xc87   : > { %v1676_v9 = vmul.f32 %v2368_v7, %v1668_v53 }
 0xc89   : > { %v1683_v12 = vmul.f32 %v2128_v8, %v1676_v9 }
 0xc8b   : > { %v1690_v14 = vadd.f32 %v2129_v11, %v1683_v12 }
 0xc8d   : > { %1691 = vst.msk [vmem:[%s566_s27] sm:$0xff] %vm578_vm0, %v1690_v14  ;;  %2265 = vmatmul.mubr.msk.f32.vlgmr.msra.gmra.mrb[10].mxu0 %vm578_vm0, %v1690_v14  ;;  %2276 = vmatmul.mubr.msk.f32.vlgmr.msra.gmra.mrb[16].mxu1 %vm578_vm0, %v1690_v14  ;;  %s574_s27 = scalar_lea.vmem %s2731_s17, %s2491_s26 }
 0xc8e   : > { %2294 = vmatprep.mubr.msk.f32.mxu0 %vm2380_vm1, %v2381_v13  ;;  %2317 = vmatpush3.bf16.msra.mxu0 %v2316_v17  ;;  %v2319_v13 = vpack.c.bf16 %v1864_v19, %v1863_v18 }
 0xc8f   : > { %2318 = vmatprep.subr.bf16.mxu0 %v2379_v10 }
 0xc92   : > { %2320 = vmatpush3.bf16.msra.mxu0 %v2319_v13 }
 0xc93   : > { %2321 = vmatprep.subr.bf16.mxu0 %v2379_v10 }
 0xc96   : > { %2323 = vmatpush3.bf16.msra.mxu0 %v2322_v22 }
 0xc97   : > { %2324 = vmatprep.subr.bf16.mxu0 %v2379_v10 }
 0xc9a   : > { %2326 = vmatpush3.bf16.msra.mxu0 %v2325_v25 }
 0xd60   : > { %v1765_v28 = vpop.f32.mrb[10].mxu0  ;;  %v1848_v29 = vpop.f32.mrb[16].mxu1 }
 0xd61   : > { %1770 = vst.msk [vmem:[%s570_s19] sm:$0xff] %vm1769_vm3, %v1765_v28  ;;  %v1849_v30 = vadd.f32 %v2131_v27, %v1848_v29  ;;  %v2266_v31 = vpop.f32.mrb[11].mxu0  ;;  %v2277_v32 = vpop.f32.mrb[17].mxu1 }
 0xd63   : > { %v1853_v33 = vmul.f32 0.044715, %v1849_v30  ;;  %v1852_v38 = vmul.f32 0.5, %v1849_v30 }
 0xd65   : > { %v1854_v34 = vmul.f32 %v1853_v33, %v1849_v30 }
 0xd67   : > { %v1855_v10 = vmul.f32 %v1854_v34, %v1849_v30 }
 0xd69   : > { %v1856_v35 = vadd.f32 %v1855_v10, %v1849_v30 }
 0xd6b   : > { %v1857_v36 = vmul.f32 0.7978846, %v1856_v35 }
 0xd6d   : > { %2369 = vtanh.f32 %v1857_v36 }
 0xd77   : > { %v2370_v37 = vpop.eup %2369 }
 0xd78   : > { %v1859_v39 = vadd.f32 1.0, %v2370_v37 }
 0xd7a   : > { %v1860_v40 = vmul.f32 %v1859_v39, %v1852_v38 }
 0xd7c   : > { %2295 = vmatmul.mubr.msk.f32.vlgmr.msra.gmra.mrb[12].mxu0 %vm1876_vm4, %v1860_v40 }
 0xe4f   : > { %v1946_v42 = vpop.f32.mrb[12].mxu0 }
 0xe50   : > { %v1947_v43 = vadd.f32 %v2133_v41, %v1946_v42  ;;  %v2296_v26 = vpop.f32.mrb[13].mxu0 }
 0xe52   : > { %1950 = vst.msk [vmem:[%s574_s27] sm:$0xff] %vm578_vm0, %v1947_v43 }
 0xe53 PF: > { %s28_s24 = sadd.s32 1, %s2377_s24  }
 0xe54   : > { %p25_p4 = scmp.ge.s32.totalorder %s28_s24, 4  }
 0xe56   :  { %27 = sbr.rel (!%p25_p4) target bundleno = 3 (0x3), region = 142 }

// kernel: _lambda_.4
= control target key start
LH: loop header
LB: loop body
LE: loop exit
PB: predicated region body
PF: predicated region fallthrough
CT: control target
= control target key end

     0   :  { %s1298_s0 = inlined_call_operand.vmem [shape: s32[4,8], index: 0, kind: input, shape index: {}]   ;;  %s1299_s1 = inlined_call_operand.vmem [shape: f32[2,2,8,1], index: 1, kind: input, shape index: {}]   ;;  %s1300_s2 = inlined_call_operand.vmem [shape: f32[16,32], index: 2, kind: input, shape index: {}]   ;;  %s1301_s3 = inlined_call_operand.vmem [shape: f32[2,2,32,64], index: 3, kind: input, shape index: {}]   ;;  %s1302_s4 = inlined_call_operand.vmem [shape: f32[2,2,1,64], index: 4, kind: input, shape index: {}]   ;;  %s1303_s5 = inlined_call_operand.vmem [shape: f32[2,2,64,32], index: 5, kind: input, shape index: {}]   ;;  %s1304_s6 = inlined_call_operand.vmem [shape: f32[2,2,1,32], index: 6, kind: input, shape index: {}]   ;;  %s1305_s7 = inlined_call_operand.vmem [shape: f32[2,16,32], index: 7, kind: output, shape index: {}]  }
   0x1   :  { %s12_s26 = sshll.u32 %s1298_s0, 4  ;;  %s13_s26 = int_to_ptr.vmem [resolvable:$true] %s12_s26 }
   0x2   :  { %s994_s27 = scalar_lea.vmem %s13_s26, 64  ;;  %p999_p1 = scmp.lt.s32.totalorder %s13_s26, %s13_s26 }
   0x3   :  { %p995_p0 = scmp.ne.s32.totalorder %s13_s26, %s994_s27  ;;  %p1000_p2 = scmp.lt.s32.totalorder %s994_s27, %s994_s27 }
   0x5   :  { %p1001_p3 = por %p1000_p2, %p999_p1 }
   0x7   :  { %p1002_p4 = pnand %p1001_p3, %p995_p0 }
   0x9   :  { %1005 = shalt.err (!%p1002_p4)  }
   0xa   :  { %s1048_s28 = smov [#allocation5]  }
   0xb   :  { %15 = dma.vmem_to_smem %s13_s26, 64, %s1048_s28, [#allocation4] }
   0xc   :  { %1026 = dma.done.wait [#allocation4], 64 }
   0xd   :  { %1027 = vsyncadd [#allocation4], 4294967232 }
   0xe   :  { %17 = sfence }
   0xf   :  { %s1097_s29 = smov 0   ;;  %s1099_s30 = smov 0  }
  0x10   :  { %s1101_s8 = smov 0   ;;  %s1103_s0 = smov 0  }
  0x11   :  { %s1105_s9 = smov 0  }
  0x12 LB: > { %1314 = sst [smem:[#allocation7_spill]] %s1038_s8  ;;  %s32_s10 = sadd.s32 1, %s1038_s8  ;;  %s1046_s9 = sphi %s1105_s9, %s23_s9   ;;  %s1042_s0 = sphi %s1103_s0, %s1330_s0   ;;  %s1038_s8 = sphi %s1101_s8, %s1329_s8   ;;  %s1034_s30 = sphi %s1099_s30, %s1328_s30   ;;  %s1030_s29 = sphi %s1097_s29, %s1327_s29  }
  0x13   : > { %1315 = sst [smem:[#allocation8_spill]] %s1042_s0  ;;  %s35_s11 = sadd.s32 1, %s1042_s0 }
  0x14   : > { %1316 = sst [smem:[#allocation9_spill]] %s1046_s9  ;;  %p33_p5 = scmp.ge.s32.totalorder %s32_s10, 2 }
  0x15   : > { %p860_p6 = scmp.ge.s32.totalorder %s1046_s9, 1  ;;  %p296_p7 = scmp.lt.s32.totalorder %s1046_s9, 5 }
  0x16   : > { %s1332_s10 = smov (%p33_p5, %s32_s10), 0  ;;  %s1334_s11 = smov (!%p33_p5, %s35_s11), %s1042_s0 }
  0x17   : > { %1317 = sst [smem:[#allocation10_spill]] %s1332_s10  ;;  %p297_p8 = pnand %p860_p6, %p296_p7 }
  0x18   : > { %p37_p9 = scmp.ge.s32.totalorder %s1334_s11, 2  ;;  %p361_p10 = scmp.lt.s32.totalorder (!%p297_p8), %s1034_s30, 1 }
  0x19   : > { %300 = sbr.rel (%p297_p8) target bundleno = 608 (0x260), region = 44  ;;  %p363_p11 = scmp.lt.s32.totalorder (!%p297_p8), %s1030_s29, 1 }
  0x1a   : > { %s1336_s11 = smov (%p37_p9, %s1334_s11), 0  ;;  %s873_s12 = sshll.u32 (!%p297_p8), %s1034_s30, 1 }
  0x1b   : > { %1318 = sst [smem:[#allocation11_spill]] %s1336_s11  ;;  %s407_s25 = sadd.s32 (!%p297_p8), %s1030_s29, %s873_s12 }
  0x1c   : > { %p874_p12 = scmp.ne.s32.totalorder (!%p297_p8), %s1030_s29, 0 }
  0x20   : > { %s1338_s30 = smov (!%p361_p10, %s1034_s30), 1  ;;  %vm412_vm0 = vcmask (!%p874_p12), 261120   ;;  %v1049_v0 = vmov (!%p874_p12), 0.0  }
  0x21   : > { %s364_s13 = scalar_select %p363_p11, %s1030_s29, 1 }
  0x22   : > { %s861_s14 = sshll.u32 %s1338_s30, 1  ;;  %s864_s15 = sshll.u32 %s1338_s30, 3 }
  0x23   : > { %s1136_s16 = sadd.s32 %s861_s14, %s364_s13  ;;  %s863_s17 = sshll.u32 %s364_s13, 2 }
  0x24   : > { %s862_s18 = sshll.u32 %s1136_s16, 3  ;;  %s375_s19 = sadd.s32 %s864_s15, %s863_s17 }
  0x25   : > { %s1142_s22 = scalar_lea.vmem %s1299_s1, %s862_s18  ;;  %s865_s23 = sshll.u32 %s375_s19, 3 }
  0x26   : > { %s377_s26 = scalar_lea.vmem %s1301_s3, %s865_s23  ;;  %s867_s11 = sshll.u32 %s364_s13, 3 }
  0x27   : > { %s868_s10 = sshll.u32 %s1338_s30, 4  ;;  %411 = sbr.rel (%p874_p12) target bundleno = 46 (0x2e), region = 48 }
  0x28   : > { %s391_s0 = sadd.s32 %s868_s10, %s867_s11  ;;  %s1158_s19 = scalar_lea.vmem %s1305_s7, %s868_s10 }
  0x29   : > { %s869_s17 = sshll.u32 %s391_s0, 3  ;;  %413 = vst.msk [vmem:[%s1158_s19] sm:$0xff] (!%p874_p12), %vm412_vm0, %v1049_v0  ;;  %414 = vst.msk [vmem:[%s1158_s19 + $0x8] sm:$0xff] (!%p874_p12), %vm412_vm0, %v1049_v0 }
  0x2a   : > { %s1163_s23 = scalar_lea.vmem %s1303_s5, %s869_s17 }
  0x2e PF: > { %v457_v1 = vld [vmem:[%s377_s26] sm:$0xff]  ;;  %v458_v2 = vld [vmem:[%s377_s26 + $0x8] sm:$0xff]  ;;  %v459_v3 = vld [vmem:[%s377_s26 + $0x10] sm:$0xff]  ;;  %v1050_v4 = vmov 0.0|0.0   ;;  %vm1051_vm1 = vmmov 0   ;;  %v1052_v7 = vmov 0.0   ;;  %s1320_s20 = scalar_lea.vmem %s1304_s6, %s1136_s16 }
  0x2f   : > { %927 = vmatprep.subr.bf16.mxu0 %v1050_v4  ;;  %v928_v5 = vpack.c.bf16 %v458_v2, %v457_v1  ;;  %v460_v6 = vld [vmem:[%s377_s26 + $0x18] sm:$0xff]  ;;  %905 = vmatprep.mubr.msk.f32.mxu0 %vm1051_vm1, %v1052_v7  ;;  %s1170_s29 = sshll.u32 %s407_s25, 7  ;;  %vm419_vm2 = vcmask 253952   ;;  %vm468_vm3 = vcmask 261120   ;;  %v551_v18 = vld [vmem:[%s1163_s23] sm:$0xff]  ;;  %v552_v19 = vld [vmem:[%s1163_s23 + $0x8] sm:$0xff] }
  0x30   : > { %s416_s30 = sld [smem:[#allocation5 + %s1170_s29]]  ;;  %s1311_s8 = sadd.s32 1, %s1170_s29  ;;  %933 = vmatprep.subr.bf16.mxu1 %v1050_v4  ;;  %924 = vmatprep.mubr.msk.f32.mxu1 %vm1051_vm1, %v1052_v7  ;;  %v931_v8 = vpack.c.bf16 %v460_v6, %v459_v3  ;;  %v553_v20 = vld [vmem:[%s1163_s23 + $0x10] sm:$0xff]  ;;  %v934_v21 = vpack.c.bf16 %v552_v19, %v551_v18  ;;  %v554_v22 = vld [vmem:[%s1163_s23 + $0x18] sm:$0xff]  ;;  %v555_v24 = vld [vmem:[%s1163_s23 + $0x20] sm:$0xff]  ;;  %v1053_v31 = vmov 0  }
  0x31   : > { %929 = vmatpush3.bf16.msra.mxu0 %v928_v5  ;;  %s422_s0 = sld [smem:[#allocation5 + %s1311_s8]]  ;;  %s1309_s9 = sadd.s32 2, %s1170_s29  ;;  %v937_v23 = vpack.c.bf16 %v554_v22, %v553_v20  ;;  %v556_v25 = vld [vmem:[%s1163_s23 + $0x28] sm:$0xff]  ;;  %v557_v27 = vld [vmem:[%s1163_s23 + $0x30] sm:$0xff]  ;;  %v558_v28 = vld [vmem:[%s1163_s23 + $0x38] sm:$0xff]  ;;  %991 = vset.pattern.permute.xlu0 %v1053_v31  ;;  %vm566_vm4 = vcmask 523264  }
  0x32   : > { %930 = vmatprep.subr.bf16.mxu0 %v1050_v4  ;;  %s427_s10 = sld [smem:[#allocation5 + %s1309_s9]]  ;;  %s1310_s11 = sadd.s32 3, %s1170_s29  ;;  %935 = vmatpush3.bf16.msra.mxu1 %v934_v21  ;;  %v940_v26 = vpack.c.bf16 %v556_v25, %v555_v24  ;;  %v943_v29 = vpack.c.bf16 %v558_v28, %v557_v27  ;;  %v640_v30 = vld [vmem:[%s1142_s22] sm:$0xff] }
  0x33   : > { %s432_s12 = sld [smem:[#allocation5 + %s1310_s11]]  ;;  %s1312_s13 = sadd.s32 4, %s1170_s29  ;;  %936 = vmatprep.subr.bf16.mxu1 %v1050_v4  ;;  %643 = vperm.xlu0 %991, %v640_v30   ;;  %v878_v45 = vld [vmem:[%s1320_s20] ss:$0 sm:$0xff] }
  0x34   : > { %s437_s26 = sld [smem:[#allocation5 + %s1312_s13]]  ;;  %s1313_s27 = sadd.s32 5, %s1170_s29 }
  0x35   : > { %932 = vmatpush3.bf16.msra.mxu0 %v931_v8  ;;  %s442_s28 = sld [smem:[#allocation5 + %s1313_s27]]  ;;  %s446_s17 = sadd.s32 6, %s1170_s29 }
  0x36   : > { %s417_s21 = scalar_lea.vmem %s1300_s2, %s416_s30  ;;  %s447_s24 = sld [smem:[#allocation5 + %s446_s17]]  ;;  %938 = vmatpush3.bf16.msra.mxu1 %v937_v23 }
  0x37   : > { %v418_v9 = vld [vmem:[%s417_s21] sm:$0x1]  ;;  %s423_s11 = scalar_lea.vmem %s1300_s2, %s422_s0  ;;  %s451_s8 = sadd.s32 7, %s1170_s29  ;;  %939 = vmatprep.subr.bf16.mxu1 %v1050_v4 }
  0x38   : > { %420 = vst.msk [vmem:[#allocation2] sm:$0x1] %vm419_vm2, %v418_v9  ;;  %v424_v10 = vld [vmem:[%s423_s11] sm:$0x1]  ;;  %s428_s27 = scalar_lea.vmem %s1300_s2, %s427_s10  ;;  %s452_s14 = sld [smem:[#allocation5 + %s451_s8]] }
  0x39   : > { %425 = vst.msk [vmem:[#allocation2 + $0x1] sm:$0x1] %vm419_vm2, %v424_v10  ;;  %v429_v11 = vld [vmem:[%s428_s27] sm:$0x1]  ;;  %s433_s18 = scalar_lea.vmem %s1300_s2, %s432_s12  ;;  %s1321_s9 = sadd.s32 1, %s1170_s29 }
  0x3a   : > { %430 = vst.msk [vmem:[#allocation2 + $0x2] sm:$0x1] %vm419_vm2, %v429_v11  ;;  %v434_v12 = vld [vmem:[%s433_s18] sm:$0x1]  ;;  %s438_s11 = scalar_lea.vmem %s1300_s2, %s437_s26  ;;  %941 = vmatpush3.bf16.msra.mxu1 %v940_v26  ;;  %s648_s18 = sld [smem:[#allocation5 + %s1170_s29]] }
  0x3b   : > { %435 = vst.msk [vmem:[#allocation2 + $0x3] sm:$0x1] %vm419_vm2, %v434_v12  ;;  %v439_v13 = vld [vmem:[%s438_s11] sm:$0x1]  ;;  %s443_s13 = scalar_lea.vmem %s1300_s2, %s442_s28  ;;  %942 = vmatprep.subr.bf16.mxu1 %v1050_v4  ;;  %s654_s11 = sld [smem:[#allocation5 + %s1321_s9]] }
  0x3c   : > { %440 = vst.msk [vmem:[#allocation2 + $0x4] sm:$0x1] %vm419_vm2, %v439_v13  ;;  %v444_v14 = vld [vmem:[%s443_s13] sm:$0x1]  ;;  %s448_s21 = scalar_lea.vmem %s1300_s2, %s447_s24  ;;  %s1319_s24 = scalar_lea.vmem %s1302_s4, %s1136_s16 }
  0x3d   : > { %445 = vst.msk [vmem:[#allocation2 + $0x5] sm:$0x1] %vm419_vm2, %v444_v14  ;;  %v449_v15 = vld [vmem:[%s448_s21] sm:$0x1]  ;;  %s1322_s15 = sadd.s32 2, %s1170_s29  ;;  %s1323_s12 = sadd.s32 3, %s1170_s29 }
  0x3e   : > { %450 = vst.msk [vmem:[#allocation2 + $0x6] sm:$0x1] %vm419_vm2, %v449_v15  ;;  %s453_s30 = scalar_lea.vmem %s1300_s2, %s452_s14  ;;  %944 = vmatpush3.bf16.msra.mxu1 %v943_v29  ;;  %v876_v32 = vld [vmem:[%s1319_s24] ss:$0 sm:$0xff]  ;;  %s660_s10 = sld [smem:[#allocation5 + %s1322_s15]] }
  0x3f   : > { %v454_v16 = vld [vmem:[%s453_s30] sm:$0x1]  ;;  %s666_s27 = sld [smem:[#allocation5 + %s1323_s12]]  ;;  %s1324_s26 = sadd.s32 4, %s1170_s29 }
  0x40   : > { %455 = vst.msk [vmem:[#allocation2 + $0x7] sm:$0x1] %vm419_vm2, %v454_v16  ;;  %s649_s0 = scalar_lea.vmem %s1158_s19, %s648_s18  ;;  %s672_s25 = sld [smem:[#allocation5 + %s1324_s26]] }
  0x41   : > { %v650_v51 = vld [vmem:[%s649_s0] sm:$0x1]  ;;  %s655_s16 = scalar_lea.vmem %s1158_s19, %s654_s11  ;;  %s1325_s14 = sadd.s32 5, %s1170_s29 }
  0x42   : > { %s678_s28 = sld [smem:[#allocation5 + %s1325_s14]] }
  0x43   : > { %s684_s22 = sld [smem:[#allocation5 + %s446_s17]] }
  0x44   : > { %s661_s13 = scalar_lea.vmem %s1158_s19, %s660_s10  ;;  %s690_s20 = sld [smem:[#allocation5 + %s451_s8]] }
  0x45   : > { %s667_s21 = scalar_lea.vmem %s1158_s19, %s666_s27 }
  0x46   : > { %s673_s30 = scalar_lea.vmem %s1158_s19, %s672_s25 }
  0x47   : > { %v456_v17 = vld [vmem:[#allocation2] sm:$0xff] }
  0x48   : > { %906 = vmatmul.mubr.msk.f32.vlgmr.msra.gmra.mrb[0].mxu0 %vm468_vm3, %v456_v17  ;;  %s679_s24 = scalar_lea.vmem %s1158_s19, %s678_s28 }
  0x49   : > { %s685_s23 = scalar_lea.vmem %s1158_s19, %s684_s22 }
  0x4a   : > { %s691_s18 = scalar_lea.vmem %s1158_s19, %s690_s20 }
  0xb2   : > { %v644_v47 = vpop.permute.xlu0 %643 }
 0x11b   : > { %v538_v33 = vpop.f32.mrb[0].mxu0 }
 0x11c   : > { %v539_v34 = vadd.f32 %v876_v32, %v538_v33  ;;  %v907_v35 = vpop.f32.mrb[1].mxu0 }
 0x11e   : > { %v543_v36 = vmul.f32 0.044715, %v539_v34  ;;  %v542_v42 = vmul.f32 0.5, %v539_v34 }
 0x120   : > { %v544_v37 = vmul.f32 %v543_v36, %v539_v34 }
 0x122   : > { %v545_v38 = vmul.f32 %v544_v37, %v539_v34 }
 0x124   : > { %v546_v39 = vadd.f32 %v545_v38, %v539_v34 }
 0x126   : > { %v547_v40 = vmul.f32 0.7978846, %v546_v39 }
 0x128   : > { %992 = vtanh.f32 %v547_v40 }
 0x132   : > { %v993_v41 = vpop.eup %992 }
 0x133   : > { %v549_v43 = vadd.f32 1.0, %v993_v41 }
 0x135   : > { %v550_v44 = vmul.f32 %v549_v43, %v542_v42 }
 0x137   : > { %925 = vmatmul.mubr.msk.f32.vlgmr.msra.gmra.mrb[0].mxu1 %vm566_vm4, %v550_v44 }
 0x20a   : > { %v636_v46 = vpop.f32.mrb[0].mxu1 }
 0x20b   : > { %v637_v48 = vadd.f32 %v878_v45, %v636_v46  ;;  %v926_v49 = vpop.f32.mrb[1].mxu1 }
 0x20d   : > { %v646_v50 = vmul.f32 %v644_v47, %v637_v48 }
 0x20f   : > { %647 = vst.msk [vmem:[#allocation3] sm:$0xff] %vm468_vm3, %v646_v50 }
 0x216   : > { %v651_v52 = vld [vmem:[#allocation3] sm:$0x1]  ;;  %v657_v55 = vld [vmem:[#allocation3 + $0x1] sm:$0x1]  ;;  %v663_v58 = vld [vmem:[#allocation3 + $0x2] sm:$0x1] }
 0x217   : > { %v652_v53 = vadd.f32 %v651_v52, %v650_v51  ;;  %v669_v61 = vld [vmem:[#allocation3 + $0x3] sm:$0x1]  ;;  %v675_v0 = vld [vmem:[#allocation3 + $0x4] sm:$0x1]  ;;  %v681_v3 = vld [vmem:[#allocation3 + $0x5] sm:$0x1] }
 0x218   : > { %v687_v6 = vld [vmem:[#allocation3 + $0x6] sm:$0x1]  ;;  %v693_v9 = vld [vmem:[#allocation3 + $0x7] sm:$0x1] }
 0x219   : > { %653 = vst.msk [vmem:[%s649_s0] sm:$0x1] %vm419_vm2, %v652_v53 }
 0x220   : > { %v656_v54 = vld [vmem:[%s655_s16] sm:$0x1] }
 0x221   : > { %v658_v56 = vadd.f32 %v657_v55, %v656_v54 }
 0x223   : > { %659 = vst.msk [vmem:[%s655_s16] sm:$0x1] %vm419_vm2, %v658_v56 }
 0x22a   : > { %v662_v57 = vld [vmem:[%s661_s13] sm:$0x1] }
 0x22b   : > { %v664_v59 = vadd.f32 %v663_v58, %v662_v57 }
 0x22d   : > { %665 = vst.msk [vmem:[%s661_s13] sm:$0x1] %vm419_vm2, %v664_v59 }
 0x234   : > { %v668_v60 = vld [vmem:[%s667_s21] sm:$0x1] }
 0x235   : > { %v670_v62 = vadd.f32 %v669_v61, %v668_v60 }
 0x237   : > { %671 = vst.msk [vmem:[%s667_s21] sm:$0x1] %vm419_vm2, %v670_v62 }
 0x23e   : > { %v674_v63 = vld [vmem:[%s673_s30] sm:$0x1] }
 0x23f   : > { %v676_v1 = vadd.f32 %v675_v0, %v674_v63 }
 0x241   : > { %677 = vst.msk [vmem:[%s673_s30] sm:$0x1] %vm419_vm2, %v676_v1 }
 0x248   : > { %v680_v2 = vld [vmem:[%s679_s24] sm:$0x1] }
 0x249   : > { %v682_v4 = vadd.f32 %v681_v3, %v680_v2 }
 0x24b   : > { %683 = vst.msk [vmem:[%s679_s24] sm:$0x1] %vm419_vm2, %v682_v4 }
 0x252   : > { %v686_v5 = vld [vmem:[%s685_s23] sm:$0x1] }
 0x253   : > { %v688_v7 = vadd.f32 %v687_v6, %v686_v5 }
 0x255   : > { %689 = vst.msk [vmem:[%s685_s23] sm:$0x1] %vm419_vm2, %v688_v7 }
 0x25c   : > { %v692_v8 = vld [vmem:[%s691_s18] sm:$0x1] }
 0x25d   : > { %v694_v10 = vadd.f32 %v693_v9, %v692_v8 }
 0x25f   : > { %695 = vst.msk [vmem:[%s691_s18] sm:$0x1] %vm419_vm2, %v694_v10 }
 0x260 PF: > { %s1326_s17 = sld [smem:[#allocation9_spill]]  ;;  %s1327_s29 = sld [smem:[#allocation7_spill]] }
 0x261   : > { %s1328_s30 = sld [smem:[#allocation8_spill]]  ;;  %s1329_s8 = sld [smem:[#allocation10_spill]] }
 0x262   : > { %s1330_s0 = sld [smem:[#allocation11_spill]] }
 0x266   : > { %s23_s9 = sadd.s32 1, %s1326_s17  }
 0x267   : > { %p20_p13 = scmp.ge.s32.totalorder %s23_s9, 6  }
 0x269   :  { %22 = sbr.rel (!%p20_p13) target bundleno = 18 (0x12), region = 106 }

// kernel: _lambda_.5
= control target key start
LH: loop header
LB: loop body
LE: loop exit
PB: predicated region body
PF: predicated region fallthrough
CT: control target
= control target key end

     0   :  { %s651_s18 = smov 0   ;;  %s653_s19 = smov 0   ;;  %s736_s0 = inlined_call_operand.vmem [shape: f32[2,16,32], index: 0, kind: input, shape index: {}]   ;;  %s737_s1 = inlined_call_operand.vmem [shape: f32[16,32], index: 1, kind: input, shape index: {}]   ;;  %s738_s2 = inlined_call_operand.vmem [shape: f32[32,2], index: 2, kind: input, shape index: {}]   ;;  %s739_s3 = inlined_call_operand.vmem [shape: f32[16,32], index: 3, kind: input, shape index: {}]   ;;  %s740_s4 = inlined_call_operand.vmem [shape: f32[16,32], index: 4, kind: input, shape index: {}, may-alias: {4,5}]   ;;  %s741_s5 = inlined_call_operand.vmem [shape: f32[16,32], index: 5, kind: output, shape index: {}, may-alias: {4,5}]  }
   0x1   :  { %s655_s20 = smov 0  }
   0x2 LB: > { %s519_s21 = sadd.s32 4294967295, %s614_s20   ;;  %s668_s22 = sadd.s32 1, %s614_s20   ;;  %s614_s20 = sphi %s655_s20, %s744_s20   ;;  %s610_s19 = sphi %s653_s19, %s743_s19   ;;  %s606_s18 = sphi %s651_s18, %s742_s18  }
   0x3   : > { %s19_s23 = ssub.s32 %s614_s20, %s668_s22  ;;  %s22_s24 = sadd.s32 1, %s610_s19 }
   0x4   : > { %p20_p0 = scmp.eq.s32.totalorder %s19_s23, 0  ;;  %p29_p1 = scmp.ne.s32.totalorder %s610_s19, %s606_s18 }
   0x5   : > { %p30_p2 = scmp.eq.s32.totalorder %s614_s20, 0  ;;  %p522_p4 = scmp.ge.s32.totalorder %s614_s20, 2 }
   0x6   : > { %s677_s25 = scalar_select %p20_p0, %s610_s19, %s22_s24  }
   0x7   : > { %p31_p3 = por %p30_p2, %p29_p1  ;;  %183 = sbr.rel (%p522_p4) target bundleno = 21 (0x15), region = 20 }
   0xe   : > { %186 = sbr.rel (!%p31_p3) target bundleno = 21 (0x15), region = 24  ;;  %s188_s26 = sand.u32 (%p31_p3), 1, %s610_s19  }
   0xf   : > { %s524_s27 = sshll.u32 (%p31_p3), %s614_s20, 3  ;;  %s523_s28 = sshll.u32 (%p31_p3), %s188_s26, 4 }
  0x10   : > { %s192_s6 = scalar_lea.vmem (%p31_p3), %s736_s0, %s524_s27  ;;  %s190_s7 = scalar_lea.vmem (%p31_p3), [#allocation2], %s523_s28 }
  0x11   : > { %v222_v0 = vld [vmem:[%s192_s6] sm:$0xff] (%p31_p3)  ;;  %v224_v1 = vld [vmem:[%s192_s6 + $0x10] sm:$0xff] (%p31_p3) }
  0x12   : > { %223 = vst [vmem:[%s190_s7] sm:$0xff] (%p31_p3), %v222_v0  ;;  %225 = vst [vmem:[%s190_s7 + $0x8] sm:$0xff] (%p31_p3), %v224_v1 }
  0x15 PF: > { %p525_p5 = scmp.ge.s32.totalorder %s614_s20, 1  ;;  %p251_p6 = scmp.lt.s32.totalorder %s614_s20, 3 }
  0x17   : > { %p252_p7 = pnand %p525_p5, %p251_p6 }
  0x18   : > { %v319_v2 = vld [vmem:[%s738_s2] sm:$0xff] (!%p252_p7)  ;;  %v320_v3 = vld [vmem:[%s738_s2 + $0x8] sm:$0xff] (!%p252_p7)  ;;  %v321_v4 = vld [vmem:[%s738_s2 + $0x10] sm:$0xff] (!%p252_p7)  ;;  %v616_v5 = vmov (!%p252_p7), 0.0|0.0   ;;  %vm617_vm0 = vmmov (!%p252_p7), 0   ;;  %v618_v8 = vmov (!%p252_p7), 0.0  }
  0x19   : > { %255 = sbr.rel (%p252_p7) target bundleno = 702 (0x2be), region = 74  ;;  %550 = vmatprep.subr.bf16.mxu0 (!%p252_p7), %v616_v5  ;;  %v551_v6 = vpack.c.bf16 (!%p252_p7), %v320_v3, %v319_v2  ;;  %v322_v7 = vld [vmem:[%s738_s2 + $0x18] sm:$0xff] (!%p252_p7)  ;;  %547 = vmatprep.mubr.msk.f32.mxu0 (!%p252_p7), %vm617_vm0, %v618_v8  ;;  %p296_p8 = scmp.lt.s32.totalorder (!%p252_p7), %s519_s21, 1  ;;  %vm314_vm1 = vcmask (!%p252_p7), 261120   ;;  %vm396_vm2 = vcmask (!%p252_p7), 15360   ;;  %v619_v19 = vmov (!%p252_p7), 0  }
  0x1a   : > { %v554_v9 = vpack.c.bf16 (!%p252_p7), %v322_v7, %v321_v4  ;;  %585 = vset.pattern.permute.xlu1 (!%p252_p7), %v619_v19  ;;  %v620_v20 = vmov (!%p252_p7), 1   ;;  %s258_s20 = sand.u32 (!%p252_p7), 1, %s606_s18  }
  0x1b   : > { %552 = vmatpush3.bf16.msra.mxu0 (!%p252_p7), %v551_v6  ;;  %587 = vset.pattern.permute.xlu0 (!%p252_p7), %v620_v20 }
  0x1c   : > { %553 = vmatprep.subr.bf16.mxu0 (!%p252_p7), %v616_v5 }
  0x1f   : > { %555 = vmatpush3.bf16.msra.mxu0 (!%p252_p7), %v554_v9 }
  0x20   : > { %s746_s21 = smov (!%p296_p8, %s519_s21), 1 }
  0x21   : > { %s703_s16 = sshll.u32 %s746_s21, 3  ;;  %s526_s21 = sshll.u32 %s258_s20, 4 }
  0x22   : > { %s299_s24 = scalar_lea.vmem %s737_s1, %s703_s16  ;;  %s260_s26 = scalar_lea.vmem [#allocation2], %s526_s21 }
  0x23   : > { %v318_v10 = vld [vmem:[%s299_s24] sm:$0xff]  ;;  %v313_v25 = vld [vmem:[%s260_s26 + $0x8] sm:$0xff]  ;;  %s303_s29 = scalar_lea.vmem %s739_s3, %s703_s16  ;;  %s307_s18 = scalar_lea.vmem %s740_s4, %s703_s16 }
  0x24   : > { %548 = vmatmul.mubr.msk.f32.vlgmr.msra.gmra.mrb[0].mxu0 %vm314_vm1, %v318_v10  ;;  %v312_v24 = vld [vmem:[%s260_s26] sm:$0xff]  ;;  %v316_v27 = vsel %vm314_vm1, %v313_v25, 0.0  ;;  %s311_s9 = scalar_lea.vmem %s741_s5, %s703_s16 }
  0x25   : > { %v315_v26 = vsel %vm314_vm1, %v312_v24, 0.0  ;;  %v408_v30 = vld [vmem:[%s303_s29] sm:$0xff] }
  0x26   : > { %v317_v29 = vadd.f32 %v316_v27, %v315_v26  ;;  %v421_v34 = vld [vmem:[%s307_s18] sm:$0xff] }
  0xf7   : > { %v392_v11 = vpop.f32.mrb[0].mxu0 }
  0xf8   : > { %v549_v12 = vpop.f32.mrb[1].mxu0  ;;  %v397_v13 = vsel %vm396_vm2, %v392_v11, -inf }
  0xf9   : > { %398 = vmax.xlane.f32.xlu0 %v397_v13 }
 0x186   : > { %v399_v14 = vpop.xlane.xlu0 %398 }
 0x187   : > { %v400_v15 = vsub.f32 %v392_v11, %v399_v14 }
 0x189   : > { %v401_v16 = vmul.f32 1.442695, %v400_v15 }
 0x18b   : > { %588 = vpow2.f32 %v401_v16 }
 0x195   : > { %v589_v17 = vpop.eup %588 }
 0x196   : > { %v403_v18 = vsel %vm396_vm2, %v589_v17, 0.0 }
 0x197   : > { %404 = vadd.xlane.f32.xlu0 %v403_v18 }
 0x224   : > { %v405_v21 = vpop.xlane.xlu0 %404 }
 0x225   : > { %590 = vrcp.f32 %v405_v21 }
 0x22f   : > { %v591_v22 = vpop.eup %590 }
 0x230   : > { %v407_v23 = vmul.f32 %v591_v22, %v589_v17 }
 0x232   : > { %411 = vperm.xlu1 %585, %v407_v23  }
 0x236   : > { %586 = vset.pattern.permute.xlu1 %v620_v20 }
 0x237   : > { %416 = vperm.xlu1 %586, %v407_v23  }
 0x2b1   : > { %v412_v28 = vpop.permute.xlu1 %411 }
 0x2b2   : > { %v414_v32 = vmul.f32 %v412_v28, %v408_v30 }
 0x2b6   : > { %v417_v31 = vpop.permute.xlu1 %416 }
 0x2b7   : > { %v419_v33 = vmul.f32 %v417_v31, %v317_v29 }
 0x2b9   : > { %v420_v35 = vadd.f32 %v419_v33, %v414_v32 }
 0x2bb   : > { %v422_v36 = vadd.f32 %v421_v34, %v420_v35 }
 0x2bd   : > { %423 = vst.msk [vmem:[%s311_s9] sm:$0xff] %vm314_vm1, %v422_v36 }
 0x2be PF: > { %p12_p9 = scmp.ge.s32.totalorder %s668_s22, 4   ;;  %s742_s18 = smov %s610_s19 }
 0x2bf   : > { %s743_s19 = smov %s677_s25  ;;  %s744_s20 = smov %s668_s22 }
 0x2c0   :  { %14 = sbr.rel (!%p12_p9) target bundleno = 2 (0x2), region = 122 }

</bundles_post_ra>
